<compile_context>
chip_gen: v7x
topology: tpu7x:2x2x1
jax: 0.10.0
libtpu: 0.0.40
codegen_flags: <defaults>
</compile_context>

<pallas_src>
import functools

import numpy as np

import jax
import jax.numpy as jnp
from jax import lax
from jax.experimental import pallas as pl
from jax.experimental.pallas import tpu as pltpu


def _pick_bt(batch):
    """Batch tile: multiple of 8, capped at 64, keeping >=4 grid steps."""
    return 8 * max(1, min(8, batch // 32))


# ---------------------------------------------------------------------------
# Fused forward kernel (one batch tile of `bt` images per grid step)
# ---------------------------------------------------------------------------
def fused_nn_kernel(x_ref, t1_ref, b1_ref, t2_ref, b2_ref, g_ref, bf_ref,
                    o_ref, *, bt):
    # x_ref: (28*bt, 28) bf16, rows = (h, b) h-major/b-minor, lanes = w
    xb = x_ref[...]

    # ---- conv1 (Toeplitz over the 5 kernel rows) + bias + ReLU -------------
    # output rows = (i, b) i in [0,24), lanes = 10*j + co  (j in [0,24))
    acc1 = jnp.dot(xb[0:24 * bt, :], t1_ref[0],
                   preferred_element_type=jnp.float32)
    for kh in range(1, 5):
        acc1 = acc1 + jnp.dot(xb[kh * bt:(kh + 24) * bt, :], t1_ref[kh],
                              preferred_element_type=jnp.float32)
    h1 = jnp.maximum(acc1 + b1_ref[...], 0.0)                  # (24*bt, 240) f32

    # ---- maxpool1 (2x2) ----------------------------------------------------
    # row direction: rows 2i' and 2i'+1 are adjacent bt-blocks (aligned).
    a = h1.reshape(12, 2 * bt, 240)
    ph1 = jnp.maximum(a[:, :bt, :], a[:, bt:, :]).reshape(12 * bt, 240)
    # col direction: pair lanes l and l+10; valid pooled lanes are 20*w' + ci,
    # the rest is garbage that the conv2 weights zero out.
    pw1 = jnp.maximum(ph1[:, :230], ph1[:, 10:]).astype(jnp.bfloat16)

    # ---- conv2 (Toeplitz over kh, channel mixing + lane select in weights) -
    # output rows = (i2, b) i2 in [0,8), lanes = 20*j2 + co  (j2 in [0,8))
    acc2 = jnp.dot(pw1[0:8 * bt, :], t2_ref[0],
                   preferred_element_type=jnp.float32)
    for kh in range(1, 5):
        acc2 = acc2 + jnp.dot(pw1[kh * bt:(kh + 8) * bt, :], t2_ref[kh],
                              preferred_element_type=jnp.float32)
    h2 = jnp.maximum(acc2 + b2_ref[...], 0.0)                  # (8*bt, 160) f32

    # ---- maxpool2 (2x2) ----------------------------------------------------
    a2 = h2.reshape(4, 2 * bt, 160)
    ph2 = jnp.maximum(a2[:, :bt, :], a2[:, bt:, :]).reshape(4 * bt, 160)
    pw2 = jnp.maximum(ph2[:, :140], ph2[:, 20:]).astype(jnp.bfloat16)
    # valid pooled lanes: 40*w2' + co (co < 20); rest zeroed by g_ref weights.

    # ---- flatten + folded fc1@fc2 (no nonlinearity between them) -----------
    # Contraction over (co, i2', w2') split over the 4 pooled rows i2'
    # (each an aligned bt-row block) -> 4 lane-contracting matmuls.
    logits = jnp.dot(pw2[0:bt, :], g_ref[0],
                     preferred_element_type=jnp.float32)
    for r in range(1, 4):
        logits = logits + jnp.dot(pw2[r * bt:(r + 1) * bt, :], g_ref[r],
                                  preferred_element_type=jnp.float32)
    o_ref[...] = logits + bf_ref[...]                          # (bt, 128) lane-dense


# ---------------------------------------------------------------------------
# Weight packing (plain JAX, outside the kernel, tiny)
# ---------------------------------------------------------------------------
def build_kernel_weights(params):
    w1, b1 = params["w1"], params["b1"]          # (10,1,5,5), (10,)
    w2, b2 = params["w2"], params["b2"]          # (20,10,5,5), (20,)
    w3, b3 = params["w3"], params["b3"]          # (320,50), (50,)
    w4, b4 = params["w4"], params["b4"]          # (50,10),  (10,)

    # conv1 Toeplitz: t1[kh, w_in, 10*j + co] = w1[co,0,kh,w_in-j]
    w_in = np.arange(28)[:, None]
    j = np.arange(24)[None, :]
    kw = w_in - j
    valid1 = ((kw >= 0) & (kw < 5)).astype(np.float32)          # (28,24)
    kw_c = np.clip(kw, 0, 4)
    w1t = jnp.transpose(w1[:, 0], (1, 2, 0))                    # (kh,kw,co)
    t1 = (w1t[:, kw_c, :] * valid1[None, :, :, None]).reshape(5, 28, 240)
    b1r = jnp.tile(b1, 24).reshape(1, 240)

    # conv2 Toeplitz on pooled lanes: input lane l = 20*w' + ci (ci<10 valid),
    # output lane 20*j2 + co:  t2[kh, l, 20*j2+co] = w2[co,ci,kh,w'-j2]
    l_in = np.arange(230)
    wgrp, ci = l_in // 20, l_in % 20
    j2 = np.arange(8)
    kw2 = wgrp[:, None] - j2[None, :]                           # (230,8)
    valid2 = ((ci[:, None] < 10) & (kw2 >= 0) & (kw2 < 5)).astype(np.float32)
    kw2_c = np.clip(kw2, 0, 4)
    ci_c = np.minimum(ci, 9)
    w2t = jnp.transpose(w2, (2, 3, 1, 0))                       # (kh,kw,ci,co)
    t2 = (w2t[:, kw2_c, ci_c[:, None], :] * valid2[None, :, :, None]).reshape(5, 230, 160)
    b2r = jnp.tile(b2, 8).reshape(1, 160)

    # fc1 @ fc2 folded (no nonlinearity between them in the spec module),
    # padded to 128 output lanes (lane-dense store), split per pooled row i2'
    # and remapped onto the pooled lane layout l = 40*w2' + co (co<20 valid):
    # g[i2', l, k] = Wf[co*16 + i2'*4 + w2', k]   (PyTorch NCHW flatten order)
    wf = jnp.pad(w3 @ w4, ((0, 0), (0, 118)))                   # (320,128)
    bf = jnp.pad(b3 @ w4 + b4, (0, 118)).reshape(1, 128)
    l2 = np.arange(140)
    w2p, co2 = l2 // 40, l2 % 40
    validf = (co2 < 20).astype(np.float32)
    co2_c = np.minimum(co2, 19)
    i2p = np.arange(4)
    flat = co2_c[:, None] * 16 + i2p[None, :] * 4 + w2p[:, None]  # (140,4)
    g = jnp.transpose(wf[flat] * validf[:, None, None], (1, 0, 2))  # (4,140,128)

    # Feed the MXU bf16 (accumulation stays f32 inside the kernel).
    t1 = t1.astype(jnp.bfloat16)
    t2 = t2.astype(jnp.bfloat16)
    g = g.astype(jnp.bfloat16)
    return t1, b1r, t2, b2r, g, bf


# ---------------------------------------------------------------------------
# Wrapper
# ---------------------------------------------------------------------------
def nn_forward(params, x):
    """x: (B, 1, 28, 28) f32 -> logits (B, 10) f32."""
    B = x.shape[0]
    BT = _pick_bt(B)
    t1, b1r, t2, b2r, g, bfr = build_kernel_weights(params)

    ntiles = -(-B // BT)
    bp = ntiles * BT
    xp = jnp.pad(x[:, 0], ((0, bp - B), (0, 0), (0, 0)))        # (bp,28,28)
    # rows within each tile: (h, b_local) h-major / b-minor; bf16 cast fused
    # into the same XLA transpose pass (halves the kernel's input DMA bytes).
    xr = (xp.reshape(ntiles, BT, 28, 28)
            .transpose(0, 2, 1, 3)
            .reshape(ntiles * 28 * BT, 28)
            .astype(jnp.bfloat16))

    kernel = functools.partial(fused_nn_kernel, bt=BT)
    out = pl.pallas_call(
        kernel,
        out_shape=jax.ShapeDtypeStruct((bp, 128), jnp.float32),
        grid=(ntiles,),
        in_specs=[
            pl.BlockSpec((28 * BT, 28), lambda gi: (gi, 0)),
            pl.BlockSpec((5, 28, 240), lambda gi: (0, 0, 0)),
            pl.BlockSpec((1, 240), lambda gi: (0, 0)),
            pl.BlockSpec((5, 230, 160), lambda gi: (0, 0, 0)),
            pl.BlockSpec((1, 160), lambda gi: (0, 0)),
            pl.BlockSpec((4, 140, 128), lambda gi: (0, 0, 0)),
            pl.BlockSpec((1, 128), lambda gi: (0, 0)),
        ],
        out_specs=pl.BlockSpec((BT, 128), lambda gi: (gi, 0)),
        compiler_params=pltpu.CompilerParams(
            dimension_semantics=("parallel",)),
    )(xr, t1, b1r, t2, b2r, g, bfr)
    return out[:B, :10]


# ---------------------------------------------------------------------------
# Pure-JAX reference (for a correctness check) and parameter init
# ---------------------------------------------------------------------------
def reference_forward(params, x):
    dn = ("NCHW", "OIHW", "NCHW")
    h = lax.conv_general_dilated(x, params["w1"], (1, 1), "VALID", dimension_numbers=dn)
    h = jnp.maximum(h + params["b1"][None, :, None, None], 0.0)
    h = lax.reduce_window(h, -jnp.inf, lax.max, (1, 1, 2, 2), (1, 1, 2, 2), "VALID")
    h = lax.conv_general_dilated(h, params["w2"], (1, 1), "VALID", dimension_numbers=dn)
    h = jnp.maximum(h + params["b2"][None, :, None, None], 0.0)
    h = lax.reduce_window(h, -jnp.inf, lax.max, (1, 1, 2, 2), (1, 1, 2, 2), "VALID")
    h = h.reshape(x.shape[0], -1)                               # NCHW flatten -> (B,320)
    h = h @ params["w3"] + params["b3"]
    return h @ params["w4"] + params["b4"]


def init_params(key):
    """Deterministic init mimicking PyTorch's default U(-1/sqrt(fan_in), ...)."""
    ks = jax.random.split(key, 8)

    def u(k, shape, fan_in):
        bound = 1.0 / jnp.sqrt(jnp.float32(fan_in))
        return jax.random.uniform(k, shape, jnp.float32, -bound, bound)

    return {
        "w1": u(ks[0], (10, 1, 5, 5), 1 * 5 * 5),
        "b1": u(ks[1], (10,), 1 * 5 * 5),
        "w2": u(ks[2], (20, 10, 5, 5), 10 * 5 * 5),
        "b2": u(ks[3], (20,), 10 * 5 * 5),
        "w3": u(ks[4], (320, 50), 320),   # stored (in, out)
        "b3": u(ks[5], (50,), 320),
        "w4": u(ks[6], (50, 10), 50),
        "b4": u(ks[7], (10,), 50),
    }


if __name__ == "__main__":
    key = jax.random.PRNGKey(0)
    pkey, xkey = jax.random.split(key)
    params = init_params(pkey)
    x = jax.random.normal(xkey, (2, 1, 28, 28), jnp.float32)

    out = jax.jit(nn_forward)(params, x)
    out = jax.block_until_ready(out)
    assert out.shape == (2, 10) and out.dtype == jnp.float32

    ref = reference_forward(params, x)
    assert jnp.allclose(out, ref, rtol=2e-2, atol=2e-2), (out, ref)
    print("KERNEL_OK")
</pallas_src>

<mosaic_0001>
module attributes {stable_mosaic.version = 11 : i64} {
  func.func @fused_nn_kernel(%arg0: i32, %arg1: memref<224x28xbf16, #tpu.memory_space<vmem>>, %arg2: memref<5x28x240xbf16, #tpu.memory_space<vmem>>, %arg3: memref<1x240xf32, #tpu.memory_space<vmem>>, %arg4: memref<5x230x160xbf16, #tpu.memory_space<vmem>>, %arg5: memref<1x160xf32, #tpu.memory_space<vmem>>, %arg6: memref<4x140x128xbf16, #tpu.memory_space<vmem>>, %arg7: memref<1x128xf32, #tpu.memory_space<vmem>>, %arg8: memref<8x128xf32, #tpu.memory_space<vmem>>) attributes {dimension_semantics = [#tpu.dimension_semantics<parallel>], iteration_bounds = array<i64: 1>, scalar_prefetch = 0 : i64, scratch_operands = 0 : i64, tpu.core_type = #tpu.core_type<tc>, window_params = [{transform_indices = @transform_0, window_bounds = array<i64: 224, 28>}, {pipeline_mode = #tpu.pipeline_mode<synchronous>, transform_indices = @transform_1, window_bounds = array<i64: 5, 28, 240>}, {pipeline_mode = #tpu.pipeline_mode<synchronous>, transform_indices = @transform_2, window_bounds = array<i64: 1, 240>}, {pipeline_mode = #tpu.pipeline_mode<synchronous>, transform_indices = @transform_3, window_bounds = array<i64: 5, 230, 160>}, {pipeline_mode = #tpu.pipeline_mode<synchronous>, transform_indices = @transform_4, window_bounds = array<i64: 1, 160>}, {pipeline_mode = #tpu.pipeline_mode<synchronous>, transform_indices = @transform_5, window_bounds = array<i64: 4, 140, 128>}, {pipeline_mode = #tpu.pipeline_mode<synchronous>, transform_indices = @transform_6, window_bounds = array<i64: 1, 128>}, {transform_indices = @transform_7, window_bounds = array<i64: 8, 128>}]} {
    %c0 = arith.constant 0 : index
    %c0_0 = arith.constant 0 : index
    %0 = vector.load %arg1[%c0, %c0_0] : memref<224x28xbf16, #tpu.memory_space<vmem>>, vector<224x28xbf16>
    %1 = vector.extract_strided_slice %0 {offsets = [0, 0], sizes = [192, 28], strides = [1, 1]} : vector<224x28xbf16> to vector<192x28xbf16>
    %c0_1 = arith.constant 0 : index
    %c0_2 = arith.constant 0 : index
    %c0_3 = arith.constant 0 : index
    %2 = vector.load %arg2[%c0_1, %c0_2, %c0_3] : memref<5x28x240xbf16, #tpu.memory_space<vmem>>, vector<1x28x240xbf16>
    %3 = vector.shape_cast %2 : vector<1x28x240xbf16> to vector<28x240xbf16>
    %cst = arith.constant dense<0.000000e+00> : vector<192x240xf32>
    %4 = tpu.matmul %1, %3, %cst {dimension_numbers = #tpu.dot_dimension_numbers<[1], [0], [0], [1], [0, 0, 1, 1], [], []>} : vector<192x28xbf16>, vector<28x240xbf16>, vector<192x240xf32> -> vector<192x240xf32>
    %5 = vector.extract_strided_slice %0 {offsets = [8, 0], sizes = [192, 28], strides = [1, 1]} : vector<224x28xbf16> to vector<192x28xbf16>
    %c1 = arith.constant 1 : index
    %c0_4 = arith.constant 0 : index
    %c0_5 = arith.constant 0 : index
    %6 = vector.load %arg2[%c1, %c0_4, %c0_5] : memref<5x28x240xbf16, #tpu.memory_space<vmem>>, vector<1x28x240xbf16>
    %7 = vector.shape_cast %6 : vector<1x28x240xbf16> to vector<28x240xbf16>
    %cst_6 = arith.constant dense<0.000000e+00> : vector<192x240xf32>
    %8 = tpu.matmul %5, %7, %cst_6 {dimension_numbers = #tpu.dot_dimension_numbers<[1], [0], [0], [1], [0, 0, 1, 1], [], []>} : vector<192x28xbf16>, vector<28x240xbf16>, vector<192x240xf32> -> vector<192x240xf32>
    %9 = arith.addf %4, %8 : vector<192x240xf32>
    %10 = vector.extract_strided_slice %0 {offsets = [16, 0], sizes = [192, 28], strides = [1, 1]} : vector<224x28xbf16> to vector<192x28xbf16>
    %c2 = arith.constant 2 : index
    %c0_7 = arith.constant 0 : index
    %c0_8 = arith.constant 0 : index
    %11 = vector.load %arg2[%c2, %c0_7, %c0_8] : memref<5x28x240xbf16, #tpu.memory_space<vmem>>, vector<1x28x240xbf16>
    %12 = vector.shape_cast %11 : vector<1x28x240xbf16> to vector<28x240xbf16>
    %cst_9 = arith.constant dense<0.000000e+00> : vector<192x240xf32>
    %13 = tpu.matmul %10, %12, %cst_9 {dimension_numbers = #tpu.dot_dimension_numbers<[1], [0], [0], [1], [0, 0, 1, 1], [], []>} : vector<192x28xbf16>, vector<28x240xbf16>, vector<192x240xf32> -> vector<192x240xf32>
    %14 = arith.addf %9, %13 : vector<192x240xf32>
    %15 = vector.extract_strided_slice %0 {offsets = [24, 0], sizes = [192, 28], strides = [1, 1]} : vector<224x28xbf16> to vector<192x28xbf16>
    %c3 = arith.constant 3 : index
    %c0_10 = arith.constant 0 : index
    %c0_11 = arith.constant 0 : index
    %16 = vector.load %arg2[%c3, %c0_10, %c0_11] : memref<5x28x240xbf16, #tpu.memory_space<vmem>>, vector<1x28x240xbf16>
    %17 = vector.shape_cast %16 : vector<1x28x240xbf16> to vector<28x240xbf16>
    %cst_12 = arith.constant dense<0.000000e+00> : vector<192x240xf32>
    %18 = tpu.matmul %15, %17, %cst_12 {dimension_numbers = #tpu.dot_dimension_numbers<[1], [0], [0], [1], [0, 0, 1, 1], [], []>} : vector<192x28xbf16>, vector<28x240xbf16>, vector<192x240xf32> -> vector<192x240xf32>
    %19 = arith.addf %14, %18 : vector<192x240xf32>
    %20 = vector.extract_strided_slice %0 {offsets = [32, 0], sizes = [192, 28], strides = [1, 1]} : vector<224x28xbf16> to vector<192x28xbf16>
    %c4 = arith.constant 4 : index
    %c0_13 = arith.constant 0 : index
    %c0_14 = arith.constant 0 : index
    %21 = vector.load %arg2[%c4, %c0_13, %c0_14] : memref<5x28x240xbf16, #tpu.memory_space<vmem>>, vector<1x28x240xbf16>
    %22 = vector.shape_cast %21 : vector<1x28x240xbf16> to vector<28x240xbf16>
    %cst_15 = arith.constant dense<0.000000e+00> : vector<192x240xf32>
    %23 = tpu.matmul %20, %22, %cst_15 {dimension_numbers = #tpu.dot_dimension_numbers<[1], [0], [0], [1], [0, 0, 1, 1], [], []>} : vector<192x28xbf16>, vector<28x240xbf16>, vector<192x240xf32> -> vector<192x240xf32>
    %24 = arith.addf %19, %23 : vector<192x240xf32>
    %c0_16 = arith.constant 0 : index
    %c0_17 = arith.constant 0 : index
    %25 = vector.load %arg3[%c0_16, %c0_17] : memref<1x240xf32, #tpu.memory_space<vmem>>, vector<1x240xf32>
    %26 = vector.broadcast %25 : vector<1x240xf32> to vector<192x240xf32>
    %27 = arith.addf %24, %26 : vector<192x240xf32>
    %cst_18 = arith.constant 0.000000e+00 : f32
    %28 = vector.broadcast %cst_18 : f32 to vector<192x240xf32>
    %29 = arith.maximumf %27, %28 : vector<192x240xf32>
    %30 = vector.shape_cast %29 : vector<192x240xf32> to vector<12x16x240xf32>
    %31 = vector.extract_strided_slice %30 {offsets = [0, 0, 0], sizes = [12, 8, 240], strides = [1, 1, 1]} : vector<12x16x240xf32> to vector<12x8x240xf32>
    %32 = vector.extract_strided_slice %30 {offsets = [0, 8, 0], sizes = [12, 8, 240], strides = [1, 1, 1]} : vector<12x16x240xf32> to vector<12x8x240xf32>
    %33 = arith.maximumf %31, %32 : vector<12x8x240xf32>
    %34 = vector.shape_cast %33 : vector<12x8x240xf32> to vector<96x240xf32>
    %35 = vector.extract_strided_slice %34 {offsets = [0, 0], sizes = [96, 230], strides = [1, 1]} : vector<96x240xf32> to vector<96x230xf32>
    %36 = vector.extract_strided_slice %34 {offsets = [0, 10], sizes = [96, 230], strides = [1, 1]} : vector<96x240xf32> to vector<96x230xf32>
    %37 = arith.maximumf %35, %36 : vector<96x230xf32>
    %38 = arith.truncf %37 : vector<96x230xf32> to vector<96x230xbf16>
    %39 = vector.extract_strided_slice %38 {offsets = [0, 0], sizes = [64, 230], strides = [1, 1]} : vector<96x230xbf16> to vector<64x230xbf16>
    %c0_19 = arith.constant 0 : index
    %c0_20 = arith.constant 0 : index
    %c0_21 = arith.constant 0 : index
    %40 = vector.load %arg4[%c0_19, %c0_20, %c0_21] : memref<5x230x160xbf16, #tpu.memory_space<vmem>>, vector<1x230x160xbf16>
    %41 = vector.shape_cast %40 : vector<1x230x160xbf16> to vector<230x160xbf16>
    %cst_22 = arith.constant dense<0.000000e+00> : vector<64x160xf32>
    %42 = tpu.matmul %39, %41, %cst_22 {dimension_numbers = #tpu.dot_dimension_numbers<[1], [0], [0], [1], [0, 0, 1, 1], [], []>} : vector<64x230xbf16>, vector<230x160xbf16>, vector<64x160xf32> -> vector<64x160xf32>
    %43 = vector.extract_strided_slice %38 {offsets = [8, 0], sizes = [64, 230], strides = [1, 1]} : vector<96x230xbf16> to vector<64x230xbf16>
    %c1_23 = arith.constant 1 : index
    %c0_24 = arith.constant 0 : index
    %c0_25 = arith.constant 0 : index
    %44 = vector.load %arg4[%c1_23, %c0_24, %c0_25] : memref<5x230x160xbf16, #tpu.memory_space<vmem>>, vector<1x230x160xbf16>
    %45 = vector.shape_cast %44 : vector<1x230x160xbf16> to vector<230x160xbf16>
    %cst_26 = arith.constant dense<0.000000e+00> : vector<64x160xf32>
    %46 = tpu.matmul %43, %45, %cst_26 {dimension_numbers = #tpu.dot_dimension_numbers<[1], [0], [0], [1], [0, 0, 1, 1], [], []>} : vector<64x230xbf16>, vector<230x160xbf16>, vector<64x160xf32> -> vector<64x160xf32>
    %47 = arith.addf %42, %46 : vector<64x160xf32>
    %48 = vector.extract_strided_slice %38 {offsets = [16, 0], sizes = [64, 230], strides = [1, 1]} : vector<96x230xbf16> to vector<64x230xbf16>
    %c2_27 = arith.constant 2 : index
    %c0_28 = arith.constant 0 : index
    %c0_29 = arith.constant 0 : index
    %49 = vector.load %arg4[%c2_27, %c0_28, %c0_29] : memref<5x230x160xbf16, #tpu.memory_space<vmem>>, vector<1x230x160xbf16>
    %50 = vector.shape_cast %49 : vector<1x230x160xbf16> to vector<230x160xbf16>
    %cst_30 = arith.constant dense<0.000000e+00> : vector<64x160xf32>
    %51 = tpu.matmul %48, %50, %cst_30 {dimension_numbers = #tpu.dot_dimension_numbers<[1], [0], [0], [1], [0, 0, 1, 1], [], []>} : vector<64x230xbf16>, vector<230x160xbf16>, vector<64x160xf32> -> vector<64x160xf32>
    %52 = arith.addf %47, %51 : vector<64x160xf32>
    %53 = vector.extract_strided_slice %38 {offsets = [24, 0], sizes = [64, 230], strides = [1, 1]} : vector<96x230xbf16> to vector<64x230xbf16>
    %c3_31 = arith.constant 3 : index
    %c0_32 = arith.constant 0 : index
    %c0_33 = arith.constant 0 : index
    %54 = vector.load %arg4[%c3_31, %c0_32, %c0_33] : memref<5x230x160xbf16, #tpu.memory_space<vmem>>, vector<1x230x160xbf16>
    %55 = vector.shape_cast %54 : vector<1x230x160xbf16> to vector<230x160xbf16>
    %cst_34 = arith.constant dense<0.000000e+00> : vector<64x160xf32>
    %56 = tpu.matmul %53, %55, %cst_34 {dimension_numbers = #tpu.dot_dimension_numbers<[1], [0], [0], [1], [0, 0, 1, 1], [], []>} : vector<64x230xbf16>, vector<230x160xbf16>, vector<64x160xf32> -> vector<64x160xf32>
    %57 = arith.addf %52, %56 : vector<64x160xf32>
    %58 = vector.extract_strided_slice %38 {offsets = [32, 0], sizes = [64, 230], strides = [1, 1]} : vector<96x230xbf16> to vector<64x230xbf16>
    %c4_35 = arith.constant 4 : index
    %c0_36 = arith.constant 0 : index
    %c0_37 = arith.constant 0 : index
    %59 = vector.load %arg4[%c4_35, %c0_36, %c0_37] : memref<5x230x160xbf16, #tpu.memory_space<vmem>>, vector<1x230x160xbf16>
    %60 = vector.shape_cast %59 : vector<1x230x160xbf16> to vector<230x160xbf16>
    %cst_38 = arith.constant dense<0.000000e+00> : vector<64x160xf32>
    %61 = tpu.matmul %58, %60, %cst_38 {dimension_numbers = #tpu.dot_dimension_numbers<[1], [0], [0], [1], [0, 0, 1, 1], [], []>} : vector<64x230xbf16>, vector<230x160xbf16>, vector<64x160xf32> -> vector<64x160xf32>
    %62 = arith.addf %57, %61 : vector<64x160xf32>
    %c0_39 = arith.constant 0 : index
    %c0_40 = arith.constant 0 : index
    %63 = vector.load %arg5[%c0_39, %c0_40] : memref<1x160xf32, #tpu.memory_space<vmem>>, vector<1x160xf32>
    %64 = vector.broadcast %63 : vector<1x160xf32> to vector<64x160xf32>
    %65 = arith.addf %62, %64 : vector<64x160xf32>
    %cst_41 = arith.constant 0.000000e+00 : f32
    %66 = vector.broadcast %cst_41 : f32 to vector<64x160xf32>
    %67 = arith.maximumf %65, %66 : vector<64x160xf32>
    %68 = vector.shape_cast %67 : vector<64x160xf32> to vector<4x16x160xf32>
    %69 = vector.extract_strided_slice %68 {offsets = [0, 0, 0], sizes = [4, 8, 160], strides = [1, 1, 1]} : vector<4x16x160xf32> to vector<4x8x160xf32>
    %70 = vector.extract_strided_slice %68 {offsets = [0, 8, 0], sizes = [4, 8, 160], strides = [1, 1, 1]} : vector<4x16x160xf32> to vector<4x8x160xf32>
    %71 = arith.maximumf %69, %70 : vector<4x8x160xf32>
    %72 = vector.shape_cast %71 : vector<4x8x160xf32> to vector<32x160xf32>
    %73 = vector.extract_strided_slice %72 {offsets = [0, 0], sizes = [32, 140], strides = [1, 1]} : vector<32x160xf32> to vector<32x140xf32>
    %74 = vector.extract_strided_slice %72 {offsets = [0, 20], sizes = [32, 140], strides = [1, 1]} : vector<32x160xf32> to vector<32x140xf32>
    %75 = arith.maximumf %73, %74 : vector<32x140xf32>
    %76 = arith.truncf %75 : vector<32x140xf32> to vector<32x140xbf16>
    %77 = vector.extract_strided_slice %76 {offsets = [0, 0], sizes = [8, 140], strides = [1, 1]} : vector<32x140xbf16> to vector<8x140xbf16>
    %c0_42 = arith.constant 0 : index
    %c0_43 = arith.constant 0 : index
    %c0_44 = arith.constant 0 : index
    %78 = vector.load %arg6[%c0_42, %c0_43, %c0_44] : memref<4x140x128xbf16, #tpu.memory_space<vmem>>, vector<1x140x128xbf16>
    %79 = vector.shape_cast %78 : vector<1x140x128xbf16> to vector<140x128xbf16>
    %cst_45 = arith.constant dense<0.000000e+00> : vector<8x128xf32>
    %80 = tpu.matmul %77, %79, %cst_45 {dimension_numbers = #tpu.dot_dimension_numbers<[1], [0], [0], [1], [0, 0, 1, 1], [], []>} : vector<8x140xbf16>, vector<140x128xbf16>, vector<8x128xf32> -> vector<8x128xf32>
    %81 = vector.extract_strided_slice %76 {offsets = [8, 0], sizes = [8, 140], strides = [1, 1]} : vector<32x140xbf16> to vector<8x140xbf16>
    %c1_46 = arith.constant 1 : index
    %c0_47 = arith.constant 0 : index
    %c0_48 = arith.constant 0 : index
    %82 = vector.load %arg6[%c1_46, %c0_47, %c0_48] : memref<4x140x128xbf16, #tpu.memory_space<vmem>>, vector<1x140x128xbf16>
    %83 = vector.shape_cast %82 : vector<1x140x128xbf16> to vector<140x128xbf16>
    %cst_49 = arith.constant dense<0.000000e+00> : vector<8x128xf32>
    %84 = tpu.matmul %81, %83, %cst_49 {dimension_numbers = #tpu.dot_dimension_numbers<[1], [0], [0], [1], [0, 0, 1, 1], [], []>} : vector<8x140xbf16>, vector<140x128xbf16>, vector<8x128xf32> -> vector<8x128xf32>
    %85 = arith.addf %80, %84 : vector<8x128xf32>
    %86 = vector.extract_strided_slice %76 {offsets = [16, 0], sizes = [8, 140], strides = [1, 1]} : vector<32x140xbf16> to vector<8x140xbf16>
    %c2_50 = arith.constant 2 : index
    %c0_51 = arith.constant 0 : index
    %c0_52 = arith.constant 0 : index
    %87 = vector.load %arg6[%c2_50, %c0_51, %c0_52] : memref<4x140x128xbf16, #tpu.memory_space<vmem>>, vector<1x140x128xbf16>
    %88 = vector.shape_cast %87 : vector<1x140x128xbf16> to vector<140x128xbf16>
    %cst_53 = arith.constant dense<0.000000e+00> : vector<8x128xf32>
    %89 = tpu.matmul %86, %88, %cst_53 {dimension_numbers = #tpu.dot_dimension_numbers<[1], [0], [0], [1], [0, 0, 1, 1], [], []>} : vector<8x140xbf16>, vector<140x128xbf16>, vector<8x128xf32> -> vector<8x128xf32>
    %90 = arith.addf %85, %89 : vector<8x128xf32>
    %91 = vector.extract_strided_slice %76 {offsets = [24, 0], sizes = [8, 140], strides = [1, 1]} : vector<32x140xbf16> to vector<8x140xbf16>
    %c3_54 = arith.constant 3 : index
    %c0_55 = arith.constant 0 : index
    %c0_56 = arith.constant 0 : index
    %92 = vector.load %arg6[%c3_54, %c0_55, %c0_56] : memref<4x140x128xbf16, #tpu.memory_space<vmem>>, vector<1x140x128xbf16>
    %93 = vector.shape_cast %92 : vector<1x140x128xbf16> to vector<140x128xbf16>
    %cst_57 = arith.constant dense<0.000000e+00> : vector<8x128xf32>
    %94 = tpu.matmul %91, %93, %cst_57 {dimension_numbers = #tpu.dot_dimension_numbers<[1], [0], [0], [1], [0, 0, 1, 1], [], []>} : vector<8x140xbf16>, vector<140x128xbf16>, vector<8x128xf32> -> vector<8x128xf32>
    %95 = arith.addf %90, %94 : vector<8x128xf32>
    %c0_58 = arith.constant 0 : index
    %c0_59 = arith.constant 0 : index
    %96 = vector.load %arg7[%c0_58, %c0_59] : memref<1x128xf32, #tpu.memory_space<vmem>>, vector<1x128xf32>
    %97 = vector.broadcast %96 : vector<1x128xf32> to vector<8x128xf32>
    %98 = arith.addf %95, %97 : vector<8x128xf32>
    %c0_60 = arith.constant 0 : index
    %c0_61 = arith.constant 0 : index
    %99 = vector.load %arg8[%c0_60, %c0_61] : memref<8x128xf32, #tpu.memory_space<vmem>>, vector<8x128xf32>
    tpu.vector_store %arg8[%c0_60, %c0_61], %98 {strides = array<i32>} : memref<8x128xf32, #tpu.memory_space<vmem>>, vector<8x128xf32>,
    return
  }
  func.func @transform_0(%arg0: i32) -> (i32, i32) {
    %c0_i32 = arith.constant 0 : i32
    %c0_i32_0 = arith.constant 0 : i32
    return %arg0, %c0_i32 : i32, i32
  }
  func.func @transform_1(%arg0: i32) -> (i32, i32, i32) {
    %c0_i32 = arith.constant 0 : i32
    %c0_i32_0 = arith.constant 0 : i32
    %c0_i32_1 = arith.constant 0 : i32
    %c0_i32_2 = arith.constant 0 : i32
    return %c0_i32, %c0_i32_0, %c0_i32_1 : i32, i32, i32
  }
  func.func @transform_2(%arg0: i32) -> (i32, i32) {
    %c0_i32 = arith.constant 0 : i32
    %c0_i32_0 = arith.constant 0 : i32
    %c0_i32_1 = arith.constant 0 : i32
    return %c0_i32, %c0_i32_0 : i32, i32
  }
  func.func @transform_3(%arg0: i32) -> (i32, i32, i32) {
    %c0_i32 = arith.constant 0 : i32
    %c0_i32_0 = arith.constant 0 : i32
    %c0_i32_1 = arith.constant 0 : i32
    %c0_i32_2 = arith.constant 0 : i32
    return %c0_i32, %c0_i32_0, %c0_i32_1 : i32, i32, i32
  }
  func.func @transform_4(%arg0: i32) -> (i32, i32) {
    %c0_i32 = arith.constant 0 : i32
    %c0_i32_0 = arith.constant 0 : i32
    %c0_i32_1 = arith.constant 0 : i32
    return %c0_i32, %c0_i32_0 : i32, i32
  }
  func.func @transform_5(%arg0: i32) -> (i32, i32, i32) {
    %c0_i32 = arith.constant 0 : i32
    %c0_i32_0 = arith.constant 0 : i32
    %c0_i32_1 = arith.constant 0 : i32
    %c0_i32_2 = arith.constant 0 : i32
    return %c0_i32, %c0_i32_0, %c0_i32_1 : i32, i32, i32
  }
  func.func @transform_6(%arg0: i32) -> (i32, i32) {
    %c0_i32 = arith.constant 0 : i32
    %c0_i32_0 = arith.constant 0 : i32
    %c0_i32_1 = arith.constant 0 : i32
    return %c0_i32, %c0_i32_0 : i32, i32
  }
  func.func @transform_7(%arg0: i32) -> (i32, i32) {
    %c0_i32 = arith.constant 0 : i32
    %c0_i32_0 = arith.constant 0 : i32
    return %arg0, %c0_i32 : i32, i32
  }
}

</mosaic_0001>

<bundles_post_ra>
// kernel: tile.13
= control target key start
LH: loop header
LB: loop body
LE: loop exit
PB: predicated region body
PF: predicated region fallthrough
CT: control target
= control target key end

     0   :  { %s34_s0 = inlined_call_operand.vmem [shape: f32[10], index: 0, kind: input, shape index: {}]   ;;  %s35_s1 = inlined_call_operand.vmem [shape: f32[24,10], index: 1, kind: output, shape index: {}]  }
   0x1   :  { %v4_v0 = vld [vmem:[%s34_s0] ss:$0 sm:$0xff] }
   0x2   :  { %5 = vst [vmem:[%s35_s1] sm:$0xff] %v4_v0  ;;  %10 = vst [vmem:[%s35_s1 + $0x8] sm:$0xff] %v4_v0 }
   0x3   :  { %11 = vst [vmem:[%s35_s1 + $0x10] sm:$0xff] %v4_v0 }

// kernel: tile.14
= control target key start
LH: loop header
LB: loop body
LE: loop exit
PB: predicated region body
PF: predicated region fallthrough
CT: control target
= control target key end

     0   :  { %vm9_vm0 = vcmask 64512   ;;  %s220_s12 = smov 120   ;;  %s221_s13 = smov 102   ;;  %vm3_vm1 = vcmask 80896   ;;  %vm13_vm2 = vcmask 15360   ;;  %vm16_vm3 = vcmask 1048512   ;;  %s334_s0 = inlined_call_operand.vmem [shape: f32[24,10], index: 0, kind: input, shape index: {}]   ;;  %s335_s1 = inlined_call_operand.vmem [shape: f32[1,240], index: 1, kind: output, shape index: {}]  }
   0x1   :  { %v172_v0 = vld [vmem:[%s334_s0 + $0xc] sm:$0x1]   ;;  %v175_v3 = vld [vmem:[%s334_s0 + $0x17] sm:$0x1]   ;;  %v174_v4 = vld [vmem:[%s334_s0 + $0xb] sm:$0x1]  }
   0x2   :  { %v173_v1 = vld [vmem:[%s334_s0 + $0xc] sm:$0x1]   ;;  %26 = vrot.lane.b32.xlu1 %v175_v3, %s221_s13  ;;  %v176_v5 = vld [vmem:[%s334_s0 + $0xa] sm:$0x1]   ;;  %s222_s18 = smov 110   ;;  %s223_s19 = smov 100  }
   0x3   :  { %v10_v2 = vsel %vm9_vm0, %v173_v1, %v172_v0  ;;  %v177_v6 = vld [vmem:[%s334_s0 + $0x16] sm:$0x1]   ;;  %v178_v7 = vld [vmem:[%s334_s0 + $0x9] sm:$0x1]   ;;  %s224_s24 = smov 92   ;;  %s225_s25 = smov 90  }
   0x4   :  { %11 = vrot.lane.b32.xlu0 %v10_v2, %s220_s12  ;;  %v179_v8 = vld [vmem:[%s334_s0 + $0x15] sm:$0x1]   ;;  %v180_v9 = vld [vmem:[%s334_s0 + $0x8] sm:$0x1]   ;;  %v2_v10 = vld [vmem:[%s334_s0] sm:$0x1]  }
   0x5   :  { %4 = vst.msk [vmem:[#allocation0] sm:$0x1] %vm3_vm1, %v2_v10   ;;  %s226_s3 = smov 82   ;;  %s227_s4 = smov 80   ;;  %v181_v11 = vld [vmem:[%s334_s0 + $0x14] sm:$0x1]  }
   0x6   :  { %33 = vrot.lane.b32.xlu1 %v176_v5, %s223_s19  ;;  %v182_v12 = vld [vmem:[%s334_s0 + $0x7] sm:$0x1]   ;;  %s228_s9 = smov 72   ;;  %s229_s10 = smov 70   ;;  %v183_v13 = vld [vmem:[%s334_s0 + $0x13] sm:$0x1]  }
   0x7   :  { %v184_v14 = vld [vmem:[%s334_s0 + $0x6] sm:$0x1]   ;;  %s230_s15 = smov 62   ;;  %s231_s16 = smov 60   ;;  %v185_v15 = vld [vmem:[%s334_s0 + $0x12] sm:$0x1]  }
   0x8   :  { %20 = vrot.lane.b32.xlu0 %v174_v4, %s222_s18  ;;  %v186_v16 = vld [vmem:[%s334_s0 + $0x5] sm:$0x1]   ;;  %s232_s21 = smov 52   ;;  %s233_s22 = smov 50   ;;  %v187_v17 = vld [vmem:[%s334_s0 + $0x11] sm:$0x1]  }
   0x9   :  { %v188_v18 = vld [vmem:[%s334_s0 + $0x4] sm:$0x1]   ;;  %s234_s27 = smov 42   ;;  %s235_s28 = smov 40   ;;  %v189_v19 = vld [vmem:[%s334_s0 + $0x10] sm:$0x1]  }
   0xa   :  { %46 = vrot.lane.b32.xlu1 %v178_v7, %s225_s25  ;;  %v190_v20 = vld [vmem:[%s334_s0 + $0x3] sm:$0x1]   ;;  %s237_s5 = smov 30   ;;  %v191_v21 = vld [vmem:[%s334_s0 + $0xf] sm:$0x1]   ;;  %s239_s11 = smov 20  }
   0xb   :  { %v192_v22 = vld [vmem:[%s334_s0 + $0x2] sm:$0x1]   ;;  %v193_v23 = vld [vmem:[%s334_s0 + $0xe] sm:$0x1]   ;;  %v194_v24 = vld [vmem:[%s334_s0 + $0x1] sm:$0x1]  }
   0xc   :  { %39 = vrot.lane.b32.xlu0 %v177_v6, %s224_s24  ;;  %s241_s17 = smov 10   ;;  %v195_v25 = vld [vmem:[%s334_s0 + $0xd] sm:$0x1]   ;;  %s242_s0 = smov 2   ;;  %vm28_vm4 = vcmask 917296   ;;  %vm22_vm5 = vcmask 982896  }
   0xd   :  { %vm35_vm6 = vcmask 900896   ;;  %vm41_vm7 = vcmask 835296   ;;  %vm48_vm8 = vcmask 818896   ;;  %vm54_vm9 = vcmask 753296  }
   0xe   :  { %59 = vrot.lane.b32.xlu1 %v180_v9, %s227_s4  ;;  %s236_s4 = smov 32   ;;  %vm61_vm10 = vcmask 736896   ;;  %vm67_vm11 = vcmask 671296   ;;  %vm74_vm12 = vcmask 654896   ;;  %vm80_vm13 = vcmask 589296  }
   0xf   :  { %vm87_vm14 = vcmask 572896   ;;  %vm93_vm15 = vcmask 507296   ;;  %vm100_vm0 = vcmask 490896   ;;  %vm106_vm1 = vcmask 425296  }
  0x10   :  { %52 = vrot.lane.b32.xlu0 %v179_v8, %s226_s3 }
  0x12   :  { %72 = vrot.lane.b32.xlu1 %v182_v12, %s229_s10  ;;  %s238_s10 = smov 22  }
  0x14   :  { %65 = vrot.lane.b32.xlu0 %v181_v11, %s228_s9 }
  0x16   :  { %85 = vrot.lane.b32.xlu1 %v184_v14, %s231_s16  ;;  %s240_s16 = smov 12  }
  0x18   :  { %78 = vrot.lane.b32.xlu0 %v183_v13, %s230_s15 }
  0x1a   :  { %98 = vrot.lane.b32.xlu1 %v186_v16, %s233_s22 }
  0x1c   :  { %91 = vrot.lane.b32.xlu0 %v185_v15, %s232_s21 }
  0x1e   :  { %111 = vrot.lane.b32.xlu1 %v188_v18, %s235_s28 }
  0x20   :  { %104 = vrot.lane.b32.xlu0 %v187_v17, %s234_s27 }
  0x22   :  { %124 = vrot.lane.b32.xlu1 %v190_v20, %s237_s5 }
  0x24   :  { %117 = vrot.lane.b32.xlu0 %v189_v19, %s236_s4 }
  0x26   :  { %137 = vrot.lane.b32.xlu1 %v192_v22, %s239_s11 }
  0x28   :  { %130 = vrot.lane.b32.xlu0 %v191_v21, %s238_s10 }
  0x2a   :  { %150 = vrot.lane.b32.xlu1 %v194_v24, %s241_s17 }
  0x2c   :  { %143 = vrot.lane.b32.xlu0 %v193_v23, %s240_s16 }
  0x30   :  { %156 = vrot.lane.b32.xlu0 %v195_v25, %s242_s0 }
  0x74   :  { %v27_v27 = vpop.permute.xlu1 %26  }
  0x76   :  { %v12_v26 = vpop.permute.xlu0 %11  }
  0x77   :  { %15 = vst.msk [vmem:[#allocation0 + $0x8] sm:$0x1] %vm13_vm2, %v12_v26   ;;  %vm113_vm2 = vcmask 408896  }
  0x78   :  { %17 = vst.msk [vmem:[#allocation0] sm:$0x1] %vm16_vm3, %v12_v26   ;;  %v34_v29 = vpop.permute.xlu1 %33   ;;  %vm119_vm3 = vcmask 343296  }
  0x79   :  { %30 = vst.msk [vmem:[#allocation0 + $0x8] sm:$0x1] %vm28_vm4, %v27_v27   ;;  %vm126_vm4 = vcmask 326896  }
  0x7a   :  { %v21_v28 = vpop.permute.xlu0 %20  }
  0x7b   :  { %23 = vst.msk [vmem:[#allocation0] sm:$0x1] %vm22_vm5, %v21_v28   ;;  %vm132_vm5 = vcmask 261296  }
  0x7c   :  { %36 = vst.msk [vmem:[#allocation0] sm:$0x1] %vm35_vm6, %v34_v29   ;;  %v47_v31 = vpop.permute.xlu1 %46   ;;  %vm139_vm6 = vcmask 244896  }
  0x7d   :  { %49 = vst.msk [vmem:[#allocation0] sm:$0x1] %vm48_vm8, %v47_v31   ;;  %vm152_vm8 = vcmask 162896  }
  0x7e   :  { %v40_v30 = vpop.permute.xlu0 %39  }
  0x7f   :  { %43 = vst.msk [vmem:[#allocation0 + $0x8] sm:$0x1] %vm41_vm7, %v40_v30   ;;  %vm145_vm7 = vcmask 179296  }
  0x80   :  { %v60_v33 = vpop.permute.xlu1 %59  }
  0x81   :  { %62 = vst.msk [vmem:[#allocation0] sm:$0x1] %vm61_vm10, %v60_v33  }
  0x82   :  { %v53_v32 = vpop.permute.xlu0 %52  }
  0x83   :  { %56 = vst.msk [vmem:[#allocation0 + $0x8] sm:$0x1] %vm54_vm9, %v53_v32   ;;  %vm158_vm9 = vcmask 97296  }
  0x84   :  { %v73_v35 = vpop.permute.xlu1 %72  }
  0x85   :  { %75 = vst.msk [vmem:[#allocation0] sm:$0x1] %vm74_vm12, %v73_v35  }
  0x86   :  { %v66_v34 = vpop.permute.xlu0 %65  }
  0x87   :  { %69 = vst.msk [vmem:[#allocation0 + $0x8] sm:$0x1] %vm67_vm11, %v66_v34  }
  0x88   :  { %v86_v37 = vpop.permute.xlu1 %85  }
  0x89   :  { %88 = vst.msk [vmem:[#allocation0] sm:$0x1] %vm87_vm14, %v86_v37  }
  0x8a   :  { %v79_v36 = vpop.permute.xlu0 %78  }
  0x8b   :  { %82 = vst.msk [vmem:[#allocation0 + $0x8] sm:$0x1] %vm80_vm13, %v79_v36  }
  0x8c   :  { %v99_v39 = vpop.permute.xlu1 %98  }
  0x8d   :  { %101 = vst.msk [vmem:[#allocation0] sm:$0x1] %vm100_vm0, %v99_v39  }
  0x8e   :  { %v92_v38 = vpop.permute.xlu0 %91  }
  0x8f   :  { %95 = vst.msk [vmem:[#allocation0 + $0x8] sm:$0x1] %vm93_vm15, %v92_v38  }
  0x90   :  { %v112_v41 = vpop.permute.xlu1 %111  }
  0x91   :  { %114 = vst.msk [vmem:[#allocation0] sm:$0x1] %vm113_vm2, %v112_v41  }
  0x92   :  { %v105_v40 = vpop.permute.xlu0 %104  }
  0x93   :  { %108 = vst.msk [vmem:[#allocation0 + $0x8] sm:$0x1] %vm106_vm1, %v105_v40  }
  0x94   :  { %v125_v43 = vpop.permute.xlu1 %124  }
  0x95   :  { %127 = vst.msk [vmem:[#allocation0] sm:$0x1] %vm126_vm4, %v125_v43  }
  0x96   :  { %v118_v42 = vpop.permute.xlu0 %117  }
  0x97   :  { %121 = vst.msk [vmem:[#allocation0 + $0x8] sm:$0x1] %vm119_vm3, %v118_v42  }
  0x98   :  { %v138_v45 = vpop.permute.xlu1 %137  }
  0x99   :  { %140 = vst.msk [vmem:[#allocation0] sm:$0x1] %vm139_vm6, %v138_v45  }
  0x9a   :  { %v131_v44 = vpop.permute.xlu0 %130  }
  0x9b   :  { %134 = vst.msk [vmem:[#allocation0 + $0x8] sm:$0x1] %vm132_vm5, %v131_v44  }
  0x9c   :  { %v151_v47 = vpop.permute.xlu1 %150  }
  0x9d   :  { %153 = vst.msk [vmem:[#allocation0] sm:$0x1] %vm152_vm8, %v151_v47  }
  0x9e   :  { %v144_v46 = vpop.permute.xlu0 %143  }
  0x9f   :  { %147 = vst.msk [vmem:[#allocation0 + $0x8] sm:$0x1] %vm145_vm7, %v144_v46  }
  0xa2   :  { %v157_v48 = vpop.permute.xlu0 %156  }
  0xa3   :  { %160 = vst.msk [vmem:[#allocation0 + $0x8] sm:$0x1] %vm158_vm9, %v157_v48  }
  0xa4   :  { %v164_v49 = vld [vmem:[#allocation0] sm:$0x1] }
  0xa5   :  { %166 = vst [vmem:[%s335_s1] sm:$0x1] %v164_v49 }
  0xaa   :  { %v168_v50 = vld [vmem:[#allocation0 + $0x8] sm:$0x1] }
  0xab   :  { %196 = vst [vmem:[%s335_s1 + $0x1] sm:$0x1] %v168_v50 }

// kernel: tile.18
= control target key start
LH: loop header
LB: loop body
LE: loop exit
PB: predicated region body
PF: predicated region fallthrough
CT: control target
= control target key end

     0   :  { %s22_s0 = inlined_call_operand.vmem [shape: f32[20], index: 0, kind: input, shape index: {}]   ;;  %s23_s1 = inlined_call_operand.vmem [shape: f32[8,20], index: 1, kind: output, shape index: {}]  }
   0x1   :  { %v4_v0 = vld [vmem:[%s22_s0] ss:$0 sm:$0xff] }
   0x2   :  { %5 = vst [vmem:[%s23_s1] sm:$0xff] %v4_v0 }

// kernel: tile.19
= control target key start
LH: loop header
LB: loop body
LE: loop exit
PB: predicated region body
PF: predicated region fallthrough
CT: control target
= control target key end

     0   :  { %vm9_vm0 = vcmask 64512   ;;  %s82_s12 = smov 120   ;;  %s83_s13 = smov 80   ;;  %vm3_vm1 = vcmask 162816   ;;  %vm13_vm2 = vcmask 97280   ;;  %vm16_vm3 = vcmask 1048512   ;;  %s132_s0 = inlined_call_operand.vmem [shape: f32[8,20], index: 0, kind: input, shape index: {}]   ;;  %s133_s1 = inlined_call_operand.vmem [shape: f32[1,160], index: 1, kind: output, shape index: {}]  }
   0x1   :  { %v66_v0 = vld [vmem:[%s132_s0 + $0x6] sm:$0x1]   ;;  %v69_v3 = vld [vmem:[%s132_s0 + $0x4] sm:$0x1]   ;;  %v68_v4 = vld [vmem:[%s132_s0 + $0x5] sm:$0x1]  }
   0x2   :  { %v67_v1 = vld [vmem:[%s132_s0 + $0x6] sm:$0x1]   ;;  %26 = vrot.lane.b32.xlu1 %v69_v3, %s83_s13  ;;  %v70_v5 = vld [vmem:[%s132_s0 + $0x3] sm:$0x1]   ;;  %v2_v6 = vld [vmem:[%s132_s0] sm:$0x1]  }
   0x3   :  { %v10_v2 = vsel %vm9_vm0, %v67_v1, %v66_v0  ;;  %4 = vst.msk [vmem:[#allocation0] sm:$0x1] %vm3_vm1, %v2_v6   ;;  %s84_s20 = smov 100   ;;  %s85_s21 = smov 60   ;;  %v71_v7 = vld [vmem:[%s132_s0 + $0x2] sm:$0x1]  }
   0x4   :  { %11 = vrot.lane.b32.xlu0 %v10_v2, %s82_s12  ;;  %v72_v8 = vld [vmem:[%s132_s0 + $0x1] sm:$0x1]   ;;  %s86_s26 = smov 40   ;;  %s87_s27 = smov 20   ;;  %v73_v9 = vld [vmem:[%s132_s0 + $0x7] sm:$0x1]  }
   0x5   :  { %s88_s0 = smov 12   ;;  %vm22_vm4 = vcmask 982816   ;;  %vm28_vm5 = vcmask 818816   ;;  %vm34_vm6 = vcmask 654816   ;;  %vm40_vm7 = vcmask 490816  }
   0x6   :  { %32 = vrot.lane.b32.xlu1 %v70_v5, %s85_s21  ;;  %vm46_vm8 = vcmask 326816   ;;  %vm52_vm9 = vcmask 261216  }
   0x8   :  { %20 = vrot.lane.b32.xlu0 %v68_v4, %s84_s20 }
   0xa   :  { %44 = vrot.lane.b32.xlu1 %v72_v8, %s87_s27 }
   0xc   :  { %38 = vrot.lane.b32.xlu0 %v71_v7, %s86_s26 }
  0x10   :  { %50 = vrot.lane.b32.xlu0 %v73_v9, %s88_s0 }
  0x74   :  { %v27_v11 = vpop.permute.xlu1 %26  }
  0x76   :  { %v12_v10 = vpop.permute.xlu0 %11  }
  0x77   :  { %15 = vst.msk [vmem:[#allocation0 + $0x8] sm:$0x1] %vm13_vm2, %v12_v10  }
  0x78   :  { %17 = vst.msk [vmem:[#allocation0] sm:$0x1] %vm16_vm3, %v12_v10   ;;  %v33_v13 = vpop.permute.xlu1 %32  }
  0x7a   :  { %v21_v12 = vpop.permute.xlu0 %20  }
  0x7b   :  { %23 = vst.msk [vmem:[#allocation0] sm:$0x1] %vm22_vm4, %v21_v12  }
  0x7c   :  { %29 = vst.msk [vmem:[#allocation0] sm:$0x1] %vm28_vm5, %v27_v11   ;;  %v45_v15 = vpop.permute.xlu1 %44  }
  0x7d   :  { %35 = vst.msk [vmem:[#allocation0] sm:$0x1] %vm34_vm6, %v33_v13  }
  0x7e   :  { %v39_v14 = vpop.permute.xlu0 %38  }
  0x7f   :  { %41 = vst.msk [vmem:[#allocation0] sm:$0x1] %vm40_vm7, %v39_v14  }
  0x80   :  { %47 = vst.msk [vmem:[#allocation0] sm:$0x1] %vm46_vm8, %v45_v15  }
  0x82   :  { %v51_v16 = vpop.permute.xlu0 %50  }
  0x83   :  { %54 = vst.msk [vmem:[#allocation0 + $0x8] sm:$0x1] %vm52_vm9, %v51_v16  }
  0x87   :  { %v58_v17 = vld [vmem:[#allocation0] sm:$0x1] }
  0x88   :  { %60 = vst [vmem:[%s133_s1] sm:$0x1] %v58_v17 }
  0x8a   :  { %v62_v18 = vld [vmem:[#allocation0 + $0x8] sm:$0x1] }
  0x8b   :  { %74 = vst [vmem:[%s133_s1 + $0x1] sm:$0x1] %v62_v18 }

// kernel: nn_forward.1
= control target key start
LH: loop header
LB: loop body
LE: loop exit
PB: predicated region body
PF: predicated region fallthrough
CT: control target
= control target key end

     0   :  { %v4707_v1 = vmov 0   ;;  %vm179_vm0 = vcmask 1045504   ;;  %vm142_vm1 = vcmask 228352   ;;  %s4708_s23 = smov 118   ;;  %vm1801_vm2 = vcmask 1042432   ;;  %s4709_s27 = smov 108   ;;  %s6089_s1 = inlined_call_operand.vmem [shape: bf16[5,28,240], index: 1, kind: input, shape index: {}]   ;;  %s6090_s0 = inlined_call_operand.vmem [shape: bf16[224,28], index: 0, kind: input, shape index: {}]   ;;  %s6091_s3 = inlined_call_operand.vmem [shape: bf16[5,230,160], index: 3, kind: input, shape index: {}]   ;;  %s6092_s2 = inlined_call_operand.vmem [shape: f32[1,240], index: 2, kind: input, shape index: {}]   ;;  %s6093_s5 = inlined_call_operand.vmem [shape: bf16[4,140,128], index: 5, kind: input, shape index: {}]   ;;  %s6094_s4 = inlined_call_operand.vmem [shape: f32[1,160], index: 4, kind: input, shape index: {}]   ;;  %s6095_s6 = inlined_call_operand.vmem [shape: f32[1,128], index: 6, kind: input, shape index: {}]   ;;  %s6096_s7 = inlined_call_operand.vmem [shape: f32[8,128], index: 7, kind: output, shape index: {}]  }
   0x1   :  { %v4394_v0 = vld [vmem:[%s6089_s1 + $0x24] ss:$8 sps:$4 sm:$0xff]   ;;  %218 = vmatprep.mubr.bf16.mxu0 %v4707_v1  ;;  %v4396_v2 = vld [vmem:[%s6089_s1 + $0x20] ss:$8 sps:$4 sm:$0xff]   ;;  %v31_v10 = vld [vmem:[%s6090_s0 + $0x10] sm:$0xf] }
   0x2   :  { %186 = vmatprep.subr.bf16.mxu0 %v4394_v0  ;;  %v4397_v3 = vld [vmem:[%s6089_s1 + $0x34] ss:$8 sps:$4 sm:$0x3f]   ;;  %v4399_v4 = vld [vmem:[%s6089_s1 + $0x30] ss:$8 sps:$4 sm:$0x3f]  }
   0x3   :  { %187 = vmatpush1.bf16.msra.mxu0 %v4396_v2  ;;  %v4766_v5 = vld [vmem:[%s6090_s0 + $0x4] sm:$0xf]  ;;  %v29_v6 = vld [vmem:[%s6090_s0 + $0x8] sm:$0xf]  ;;  %v181_v7 = vsel %vm179_vm0, %v4399_v4, 0  ;;  %vm1478_vm3 = vcmask 965632  }
   0x4   :  { %3561 = vmatprep.subr.msk.bf16.mxu0 %vm179_vm0, %v4397_v3  ;;  %v4404_v8 = vld [vmem:[%s6089_s1 + $0x4] ss:$8 sps:$4 sm:$0xff]   ;;  %v3545_v11 = vcombine.low %v4766_v5, %v29_v6  ;;  %v32_v12 = vld [vmem:[%s6090_s0 + $0x14] sm:$0xf]  ;;  %v33_v13 = vld [vmem:[%s6090_s0 + $0x18] sm:$0xf] }
   0x5   :  { %v30_v9 = vld [vmem:[%s6090_s0 + $0xc] sm:$0xf]  ;;  %v34_v14 = vld [vmem:[%s6090_s0 + $0x1c] sm:$0xf]  ;;  %v4402_v16 = vld [vmem:[%s6089_s1] ss:$8 sps:$4 sm:$0xff]   ;;  %v4803_v19 = vcombine.low %v31_v10, %v32_v12  ;;  %v4843_v33 = vcombine.low %v32_v12, %v33_v13 }
   0x6   :  { %v4792_v15 = vcombine.low %v29_v6, %v30_v9  ;;  %v35_v17 = vld [vmem:[%s6090_s0 + $0x20] sm:$0xf]  ;;  %v36_v18 = vld [vmem:[%s6090_s0 + $0x24] sm:$0xf]  ;;  %v4805_v20 = vcombine.low %v33_v13, %v34_v14  ;;  %v37_v21 = vld [vmem:[%s6090_s0 + $0x28] sm:$0xf]  ;;  %v4827_v28 = vcombine.low %v30_v9, %v31_v10 }
   0x7   :  { %189 = vmatpush1.bf16.msra.mxu0 %v181_v7  ;;  %v4810_v22 = vcombine.low %v35_v17, %v36_v18  ;;  %v38_v23 = vld [vmem:[%s6090_s0 + $0x2c] sm:$0xf]  ;;  %v4411_v24 = vld [vmem:[%s6089_s1 + $0x14] ss:$8 sps:$4 sm:$0x3f]   ;;  %v4856_v37 = vcombine.low %v34_v14, %v35_v17  ;;  %v4869_v41 = vcombine.low %v36_v18, %v37_v21  ;;  %vm1620_vm4 = vcmask 1043456  }
   0x8   :  { %413 = vmatprep.subr.bf16.mxu0 %v4404_v8  ;;  %v4413_v25 = vld [vmem:[%s6089_s1 + $0x10] ss:$8 sps:$4 sm:$0x3f]   ;;  %v4823_v26 = vcombine.low %v37_v21, %v38_v23  ;;  %v4421_v29 = vld [vmem:[%s6089_s1 + $0x44] ss:$8 sps:$4 sm:$0xff]   ;;  %vm1788_vm5 = vcmask 834560  }
   0x9   :  { %v408_v27 = vsel %vm179_vm0, %v4413_v25, 0  ;;  %v39_v30 = vld [vmem:[%s6090_s0 + $0x30] sm:$0xf]  ;;  %v40_v31 = vld [vmem:[%s6090_s0 + $0x34] sm:$0xf]  ;;  %vm3019_vm6 = vcmask 883712  }
   0xa   :  { %3562 = vmatmul.mubr.msk.bf16.vlgmr.msra.gmra.mrb[0].mxu0 %vm142_vm1, %v3545_v11  ;;  %v4841_v32 = vcombine.low %v39_v30, %v40_v31  ;;  %v41_v34 = vld [vmem:[%s6090_s0 + $0x38] sm:$0xf]  ;;  %v42_v35 = vld [vmem:[%s6090_s0 + $0x3c] sm:$0xf]  ;;  %v43_v38 = vld [vmem:[%s6090_s0 + $0x40] sm:$0xf]  ;;  %v4882_v45 = vcombine.low %v38_v23, %v39_v30 }
   0xb   :  { %414 = vmatpush1.bf16.msra.mxu0 %v4402_v16  ;;  %228 = vmatprep.mubr.bf16.mxu0 %v4707_v1  ;;  %v4854_v36 = vcombine.low %v41_v34, %v42_v35  ;;  %v44_v39 = vld [vmem:[%s6090_s0 + $0x44] sm:$0xf]  ;;  %v45_v42 = vld [vmem:[%s6090_s0 + $0x48] sm:$0xf]  ;;  %v46_v43 = vld [vmem:[%s6090_s0 + $0x4c] sm:$0xf]  ;;  %v4895_v49 = vcombine.low %v40_v31, %v41_v34  ;;  %v4908_v53 = vcombine.low %v42_v35, %v43_v38 }
   0xc   :  { %3590 = vmatprep.subr.msk.bf16.mxu0 %vm179_vm0, %v4411_v24  ;;  %v4867_v40 = vcombine.low %v43_v38, %v44_v39  ;;  %v4880_v44 = vcombine.low %v45_v42, %v46_v43  ;;  %v47_v46 = vld [vmem:[%s6090_s0 + $0x50] sm:$0xf]  ;;  %v48_v47 = vld [vmem:[%s6090_s0 + $0x54] sm:$0xf]  ;;  %v49_v50 = vld [vmem:[%s6090_s0 + $0x58] sm:$0xf]  ;;  %v4913_v54 = vcombine.low %v44_v39, %v45_v42 }
   0xd   :  { %v4893_v48 = vcombine.low %v47_v46, %v48_v47  ;;  %v50_v51 = vld [vmem:[%s6090_s0 + $0x5c] sm:$0xf]  ;;  %v4918_v55 = vcombine.low %v46_v43, %v47_v46  ;;  %v4923_v56 = vcombine.low %v48_v47, %v49_v50  ;;  %v4931_v57 = vld [vmem:[%s6090_s0 + $0x60] sm:$0xf]  ;;  %v4438_v2 = vld [vmem:[%s6089_s1 + $0x64] ss:$8 sps:$4 sm:$0xff]  }
   0xe   :  { %v4906_v52 = vcombine.low %v49_v50, %v50_v51  ;;  %v4934_v58 = vcombine.low %v50_v51, %v4931_v57  ;;  %v27_v59 = vld [vmem:[%s6090_s0] sm:$0xf]  ;;  %v4428_v62 = vld [vmem:[%s6089_s1 + $0x54] ss:$8 sps:$4 sm:$0x3f]   ;;  %vm3139_vm7 = vcmask 97280  }
   0xf   :  { %416 = vmatpush1.bf16.msra.mxu0 %v408_v27  ;;  %v3574_v60 = vcombine.low %v27_v59, %v4766_v5  ;;  %v4419_v61 = vld [vmem:[%s6089_s1 + $0x40] ss:$8 sps:$4 sm:$0xff]   ;;  %v4430_v63 = vld [vmem:[%s6089_s1 + $0x50] ss:$8 sps:$4 sm:$0x3f]  }
  0x10   :  { %601 = vmatprep.subr.bf16.mxu0 %v4421_v29  ;;  %v596_v0 = vsel %vm179_vm0, %v4430_v63, 0  ;;  %v4436_v3 = vld [vmem:[%s6089_s1 + $0x60] ss:$8 sps:$4 sm:$0xff]   ;;  %v4439_v4 = vld [vmem:[%s6089_s1 + $0x74] ss:$8 sps:$4 sm:$0x3f]   ;;  %v1276_v29 = vlaneseq }
  0x11   :  { %v4441_v5 = vld [vmem:[%s6089_s1 + $0x70] ss:$8 sps:$4 sm:$0x3f]   ;;  %v4445_v7 = vld [vmem:[%s6089_s1 + $0x84] ss:$8 sps:$4 sm:$0xff]  }
  0x12   :  { %3563 = vmatmul.mubr.msk.bf16.gmra.mrb[4].mxu0 %vm142_vm1, %v4827_v28  ;;  %v832_v6 = vsel %vm179_vm0, %v4441_v5, 0  ;;  %v52_v8 = vld [vmem:[%s6090_s0 + $0x64] sm:$0xf]  ;;  %v4443_v10 = vld [vmem:[%s6089_s1 + $0x80] ss:$8 sps:$4 sm:$0xff]  }
  0x13   :  { %238 = vmatprep.mubr.bf16.mxu0 %v4707_v1  ;;  %v3607_v9 = vcombine.low %v4931_v57, %v52_v8  ;;  %v4446_v11 = vld [vmem:[%s6089_s1 + $0x94] ss:$8 sps:$4 sm:$0x3f]   ;;  %v4448_v12 = vld [vmem:[%s6089_s1 + $0x90] ss:$8 sps:$4 sm:$0x3f]  }
  0x14   :  { %v1068_v13 = vsel %vm179_vm0, %v4448_v12, 0  ;;  %v53_v14 = vld [vmem:[%s6090_s0 + $0x68] sm:$0xf]  ;;  %v54_v16 = vld [vmem:[%s6090_s0 + $0x6c] sm:$0xf] }
  0x15   :  { %v3651_v17 = vcombine.low %v53_v14, %v54_v16  ;;  %v4451_v18 = vld [vmem:[%s6091_s3 + $0xec] ss:$8 sps:$4 sm:$0xff]   ;;  %v4456_v21 = vld [vmem:[%s6091_s3 + $0xf8] ss:$8 sps:$4 sm:$0xff]   ;;  %v4459_v23 = vld [vmem:[%s6091_s3 + $0x108] ss:$8 sps:$4 sm:$0xff]  }
  0x16   :  { %1808 = vmatprep.subr.bf16.mxu1 %v4451_v18  ;;  %v4460_v24 = vld [vmem:[%s6091_s3 + $0x11c] ss:$8 sps:$4 sm:$0xff]   ;;  %v4462_v25 = vld [vmem:[%s6091_s3 + $0x118] ss:$8 sps:$4 sm:$0xff]   ;;  %v4465_v27 = vld [vmem:[%s6091_s3 + $0x128] ss:$8 sps:$4 sm:$0xff]  }
  0x17   :  { %v4468_v30 = vld [vmem:[%s6091_s3 + $0x138] ss:$8 sps:$4 sm:$0xff]   ;;  %v4469_v31 = vld [vmem:[%s6091_s3 + $0x14c] ss:$8 sps:$4 sm:$0xff]   ;;  %v4472_v39 = vld [vmem:[%s6091_s3 + $0x15c] ss:$8 sps:$4 sm:$0xff]  }
  0x18   :  { %v1274_v34 = vld [vmem:[%s6092_s2] sm:$0x3]  ;;  %v4475_v46 = vld [vmem:[%s6091_s3 + $0x16c] ss:$8 sps:$4 sm:$0xff]   ;;  %v4477_v47 = vld [vmem:[%s6091_s3 + $0x168] ss:$8 sps:$4 sm:$0xff]  }
  0x19   :  { %v4480_v57 = vld [vmem:[%s6091_s3 + $0x178] ss:$8 sps:$4 sm:$0xff]   ;;  %v4483_v5 = vld [vmem:[%s6091_s3 + $0x188] ss:$8 sps:$4 sm:$0xff]  }
  0x1a   :  { %3564 = vmatmul.mubr.msk.bf16.gmra.mrb[8].mxu0 %vm142_vm1, %v4843_v33 }
  0x1b   :  { %248 = vmatprep.mubr.bf16.mxu0 %v4707_v1 }
  0x22   :  { %3565 = vmatmul.mubr.msk.bf16.gmra.mrb[12].mxu0 %vm142_vm1, %v4856_v37 }
  0x23   :  { %258 = vmatprep.mubr.bf16.mxu0 %v4707_v1 }
  0x2a   :  { %3566 = vmatmul.mubr.msk.bf16.gmra.mrb[16].mxu0 %vm142_vm1, %v4869_v41 }
  0x2b   :  { %268 = vmatprep.mubr.bf16.mxu0 %v4707_v1 }
  0x32   :  { %3567 = vmatmul.mubr.msk.bf16.gmra.mrb[20].mxu0 %vm142_vm1, %v4882_v45 }
  0x33   :  { %278 = vmatprep.mubr.bf16.mxu0 %v4707_v1 }
  0x3a   :  { %3568 = vmatmul.mubr.msk.bf16.gmra.mrb[24].mxu0 %vm142_vm1, %v4895_v49 }
  0x3b   :  { %288 = vmatprep.mubr.bf16.mxu0 %v4707_v1 }
  0x42   :  { %3569 = vmatmul.mubr.msk.bf16.gmra.mrb[28].mxu0 %vm142_vm1, %v4908_v53 }
  0x43   :  { %298 = vmatprep.mubr.bf16.mxu0 %v4707_v1 }
  0x4a   :  { %3570 = vmatmul.mubr.msk.bf16.gmra.mrb[32].mxu0 %vm142_vm1, %v4913_v54 }
  0x4b   :  { %308 = vmatprep.mubr.bf16.mxu0 %v4707_v1 }
  0x52   :  { %3571 = vmatmul.mubr.msk.bf16.gmra.mrb[36].mxu0 %vm142_vm1, %v4918_v55 }
  0x53   :  { %318 = vmatprep.mubr.bf16.mxu0 %v4707_v1 }
  0x5a   :  { %3572 = vmatmul.mubr.msk.bf16.gmra.mrb[40].mxu0 %vm142_vm1, %v4923_v56 }
  0x5b   :  { %328 = vmatprep.mubr.bf16.mxu0 %v4707_v1 }
  0x62   :  { %3573 = vmatmul.mubr.msk.bf16.gmra.mrb[44].mxu0 %vm142_vm1, %v4934_v58 }
  0x63   :  { %445 = vmatprep.mubr.bf16.mxu0 %v4707_v1 }
  0x6a   :  { %3591 = vmatmul.mubr.msk.bf16.vlgmr.msra.gmra.mrb[0].mxu0 %vm142_vm1, %v3574_v60 }
  0x6b   :  { %602 = vmatpush1.bf16.msra.mxu0 %v4419_v61  ;;  %455 = vmatprep.mubr.bf16.mxu0 %v4707_v1 }
  0x6c   :  { %3612 = vmatprep.subr.msk.bf16.mxu0 %vm179_vm0, %v4428_v62 }
  0x6f   :  { %604 = vmatpush1.bf16.msra.mxu0 %v596_v0 }
  0x70   :  { %837 = vmatprep.subr.bf16.mxu0 %v4438_v2  ;;  %v4481_v2 = vld [vmem:[%s6091_s3 + $0x18c] ss:$8 sps:$4 sm:$0xff]  }
  0x72   :  { %3592 = vmatmul.mubr.msk.bf16.gmra.mrb[4].mxu0 %vm142_vm1, %v4792_v15 }
  0x73   :  { %465 = vmatprep.mubr.bf16.mxu0 %v4707_v1 }
  0x7a   :  { %3593 = vmatmul.mubr.msk.bf16.gmra.mrb[8].mxu0 %vm142_vm1, %v4803_v19 }
  0x7b   :  { %475 = vmatprep.mubr.bf16.mxu0 %v4707_v1 }
  0x82   :  { %3594 = vmatmul.mubr.msk.bf16.gmra.mrb[12].mxu0 %vm142_vm1, %v4805_v20 }
  0x83   :  { %485 = vmatprep.mubr.bf16.mxu0 %v4707_v1 }
  0x8a   :  { %3595 = vmatmul.mubr.msk.bf16.gmra.mrb[16].mxu0 %vm142_vm1, %v4810_v22 }
  0x8b   :  { %495 = vmatprep.mubr.bf16.mxu0 %v4707_v1 }
  0x92   :  { %3596 = vmatmul.mubr.msk.bf16.gmra.mrb[20].mxu0 %vm142_vm1, %v4823_v26 }
  0x93   :  { %505 = vmatprep.mubr.bf16.mxu0 %v4707_v1 }
  0x9a   :  { %3597 = vmatmul.mubr.msk.bf16.gmra.mrb[24].mxu0 %vm142_vm1, %v4841_v32 }
  0x9b   :  { %515 = vmatprep.mubr.bf16.mxu0 %v4707_v1 }
  0xa2   :  { %3598 = vmatmul.mubr.msk.bf16.gmra.mrb[28].mxu0 %vm142_vm1, %v4854_v36 }
  0xa3   :  { %525 = vmatprep.mubr.bf16.mxu0 %v4707_v1 }
  0xaa   :  { %3599 = vmatmul.mubr.msk.bf16.gmra.mrb[32].mxu0 %vm142_vm1, %v4867_v40 }
  0xab   :  { %535 = vmatprep.mubr.bf16.mxu0 %v4707_v1 }
  0xb2   :  { %3600 = vmatmul.mubr.msk.bf16.gmra.mrb[36].mxu0 %vm142_vm1, %v4880_v44 }
  0xb3   :  { %545 = vmatprep.mubr.bf16.mxu0 %v4707_v1 }
  0xba   :  { %3601 = vmatmul.mubr.msk.bf16.gmra.mrb[40].mxu0 %vm142_vm1, %v4893_v48 }
  0xbb   :  { %555 = vmatprep.mubr.bf16.mxu0 %v4707_v1 }
  0xc2   :  { %3602 = vmatmul.mubr.msk.bf16.gmra.mrb[44].mxu0 %vm142_vm1, %v4906_v52 }
  0xc3   :  { %633 = vmatprep.mubr.bf16.mxu0 %v4707_v1 }
  0xca   :  { %3613 = vmatmul.mubr.msk.bf16.vlgmr.msra.gmra.mrb[0].mxu0 %vm142_vm1, %v4792_v15  ;;  %v3629_v15 = vcombine.low %v52_v8, %v53_v14 }
  0xcb   :  { %838 = vmatpush1.bf16.msra.mxu0 %v4436_v3  ;;  %643 = vmatprep.mubr.bf16.mxu0 %v4707_v1 }
  0xcc   :  { %3634 = vmatprep.subr.msk.bf16.mxu0 %vm179_vm0, %v4439_v4 }
  0xcf   :  { %840 = vmatpush1.bf16.msra.mxu0 %v832_v6 }
  0xd0   :  { %1073 = vmatprep.subr.bf16.mxu0 %v4445_v7 }
  0xd2   :  { %3614 = vmatmul.mubr.msk.bf16.gmra.mrb[4].mxu0 %vm142_vm1, %v4803_v19 }
  0xd3   :  { %653 = vmatprep.mubr.bf16.mxu0 %v4707_v1 }
  0xda   :  { %3615 = vmatmul.mubr.msk.bf16.gmra.mrb[8].mxu0 %vm142_vm1, %v4805_v20 }
  0xdb   :  { %663 = vmatprep.mubr.bf16.mxu0 %v4707_v1 }
  0xe2   :  { %3616 = vmatmul.mubr.msk.bf16.gmra.mrb[12].mxu0 %vm142_vm1, %v4810_v22 }
  0xe3   :  { %673 = vmatprep.mubr.bf16.mxu0 %v4707_v1 }
  0xea   :  { %3617 = vmatmul.mubr.msk.bf16.gmra.mrb[16].mxu0 %vm142_vm1, %v4823_v26 }
  0xeb   :  { %683 = vmatprep.mubr.bf16.mxu0 %v4707_v1 }
  0xf2   :  { %3618 = vmatmul.mubr.msk.bf16.gmra.mrb[20].mxu0 %vm142_vm1, %v4841_v32 }
  0xf3   :  { %693 = vmatprep.mubr.bf16.mxu0 %v4707_v1 }
  0xfa   :  { %3619 = vmatmul.mubr.msk.bf16.gmra.mrb[24].mxu0 %vm142_vm1, %v4854_v36 }
  0xfb   :  { %703 = vmatprep.mubr.bf16.mxu0 %v4707_v1 }
 0x102   :  { %3620 = vmatmul.mubr.msk.bf16.gmra.mrb[28].mxu0 %vm142_vm1, %v4867_v40 }
 0x103   :  { %713 = vmatprep.mubr.bf16.mxu0 %v4707_v1 }
 0x10a   :  { %3621 = vmatmul.mubr.msk.bf16.gmra.mrb[32].mxu0 %vm142_vm1, %v4880_v44 }
 0x10b   :  { %723 = vmatprep.mubr.bf16.mxu0 %v4707_v1 }
 0x112   :  { %3622 = vmatmul.mubr.msk.bf16.gmra.mrb[36].mxu0 %vm142_vm1, %v4893_v48 }
 0x113   :  { %733 = vmatprep.mubr.bf16.mxu0 %v4707_v1 }
 0x11a   :  { %3623 = vmatmul.mubr.msk.bf16.gmra.mrb[40].mxu0 %vm142_vm1, %v4906_v52 }
 0x11b   :  { %743 = vmatprep.mubr.bf16.mxu0 %v4707_v1 }
 0x122   :  { %3624 = vmatmul.mubr.msk.bf16.gmra.mrb[44].mxu0 %vm142_vm1, %v3607_v9 }
 0x123   :  { %869 = vmatprep.mubr.bf16.mxu0 %v4707_v1 }
 0x12a   :  { %3635 = vmatmul.mubr.msk.bf16.vlgmr.msra.gmra.mrb[0].mxu0 %vm142_vm1, %v4827_v28  ;;  %v4466_v28 = vld [vmem:[%s6091_s3 + $0x13c] ss:$8 sps:$4 sm:$0xff]  }
 0x12b   :  { %1074 = vmatpush1.bf16.msra.mxu0 %v4443_v10  ;;  %879 = vmatprep.mubr.bf16.mxu0 %v4707_v1 }
 0x12c   :  { %3656 = vmatprep.subr.msk.bf16.mxu0 %vm179_vm0, %v4446_v11  ;;  %v4484_v11 = vld [vmem:[%s6091_s3 + $0x19c] ss:$8 sps:$4 sm:$0xff]  }
 0x12f   :  { %1076 = vmatpush1.bf16.msra.mxu0 %v1068_v13  ;;  %v4486_v13 = vld [vmem:[%s6091_s3 + $0x198] ss:$8 sps:$4 sm:$0xff]  }
 0x132   :  { %3636 = vmatmul.mubr.msk.bf16.gmra.mrb[4].mxu0 %vm142_vm1, %v4843_v33  ;;  %v4471_v33 = vld [vmem:[%s6091_s3 + $0x148] ss:$8 sps:$4 sm:$0xff]  }
 0x133   :  { %889 = vmatprep.mubr.bf16.mxu0 %v4707_v1 }
 0x13a   :  { %3637 = vmatmul.mubr.msk.bf16.gmra.mrb[8].mxu0 %vm142_vm1, %v4856_v37 }
 0x13b   :  { %899 = vmatprep.mubr.bf16.mxu0 %v4707_v1 }
 0x142   :  { %3638 = vmatmul.mubr.msk.bf16.gmra.mrb[12].mxu0 %vm142_vm1, %v4869_v41 }
 0x143   :  { %909 = vmatprep.mubr.bf16.mxu0 %v4707_v1 }
 0x14a   :  { %3639 = vmatmul.mubr.msk.bf16.gmra.mrb[16].mxu0 %vm142_vm1, %v4882_v45 }
 0x14b   :  { %919 = vmatprep.mubr.bf16.mxu0 %v4707_v1 }
 0x152   :  { %3640 = vmatmul.mubr.msk.bf16.gmra.mrb[20].mxu0 %vm142_vm1, %v4895_v49 }
 0x153   :  { %929 = vmatprep.mubr.bf16.mxu0 %v4707_v1 }
 0x15a   :  { %3641 = vmatmul.mubr.msk.bf16.gmra.mrb[24].mxu0 %vm142_vm1, %v4908_v53 }
 0x15b   :  { %939 = vmatprep.mubr.bf16.mxu0 %v4707_v1 }
 0x162   :  { %3642 = vmatmul.mubr.msk.bf16.gmra.mrb[28].mxu0 %vm142_vm1, %v4913_v54 }
 0x163   :  { %949 = vmatprep.mubr.bf16.mxu0 %v4707_v1 }
 0x16a   :  { %3643 = vmatmul.mubr.msk.bf16.gmra.mrb[32].mxu0 %vm142_vm1, %v4918_v55  ;;  %v4478_v55 = vld [vmem:[%s6091_s3 + $0x17c] ss:$8 sps:$4 sm:$0xff]  }
 0x16b   :  { %959 = vmatprep.mubr.bf16.mxu0 %v4707_v1 }
 0x172   :  { %3644 = vmatmul.mubr.msk.bf16.gmra.mrb[36].mxu0 %vm142_vm1, %v4923_v56 }
 0x173   :  { %969 = vmatprep.mubr.bf16.mxu0 %v4707_v1 }
 0x17a   :  { %3645 = vmatmul.mubr.msk.bf16.gmra.mrb[40].mxu0 %vm142_vm1, %v4934_v58 }
 0x17b   :  { %979 = vmatprep.mubr.bf16.mxu0 %v4707_v1 }
 0x182   :  { %3646 = vmatmul.mubr.msk.bf16.gmra.mrb[44].mxu0 %vm142_vm1, %v3629_v15 }
 0x183   :  { %1105 = vmatprep.mubr.bf16.mxu0 %v4707_v1 }
 0x18a   :  { %3657 = vmatmul.mubr.msk.bf16.vlgmr.msra.gmra.mrb[0].mxu0 %vm142_vm1, %v4803_v19  ;;  %v4453_v19 = vld [vmem:[%s6091_s3 + $0xe8] ss:$8 sps:$4 sm:$0xff]  }
 0x18b   :  { %1115 = vmatprep.mubr.bf16.mxu0 %v4707_v1  ;;  %1809 = vmatpush1.bf16.msra.mxu1 %v4453_v19 }
 0x192   :  { %3658 = vmatmul.mubr.msk.bf16.gmra.mrb[4].mxu0 %vm142_vm1, %v4805_v20  ;;  %v4454_v20 = vld [vmem:[%s6091_s3 + $0xfc] ss:$8 sps:$4 sm:$0xff]  }
 0x193   :  { %1125 = vmatprep.mubr.bf16.mxu0 %v4707_v1  ;;  %1810 = vmatprep.subr.bf16.mxu1 %v4454_v20 }
 0x194   :  { %1811 = vmatpush1.bf16.msra.mxu1 %v4456_v21  ;;  %v4487_v21 = vld [vmem:[%s6091_s3 + $0x1ac] ss:$8 sps:$4 sm:$0xff]  }
 0x19a   :  { %3659 = vmatmul.mubr.msk.bf16.gmra.mrb[8].mxu0 %vm142_vm1, %v4810_v22  ;;  %v4457_v22 = vld [vmem:[%s6091_s3 + $0x10c] ss:$8 sps:$4 sm:$0xff]  }
 0x19b   :  { %1135 = vmatprep.mubr.bf16.mxu0 %v4707_v1  ;;  %1812 = vmatprep.subr.bf16.mxu1 %v4457_v22  ;;  %v4489_v22 = vld [vmem:[%s6091_s3 + $0x1a8] ss:$8 sps:$4 sm:$0xff]  }
 0x19c   :  { %1813 = vmatpush1.bf16.msra.mxu1 %v4459_v23 }
 0x19d   :  { %1814 = vmatprep.subr.bf16.mxu1 %v4460_v24 }
 0x1a0   :  { %1815 = vmatpush1.bf16.msra.mxu1 %v4462_v25 }
 0x1a2   :  { %3660 = vmatmul.mubr.msk.bf16.gmra.mrb[12].mxu0 %vm142_vm1, %v4823_v26  ;;  %v4463_v26 = vld [vmem:[%s6091_s3 + $0x12c] ss:$8 sps:$4 sm:$0xff]  }
 0x1a3   :  { %1145 = vmatprep.mubr.bf16.mxu0 %v4707_v1  ;;  %1816 = vmatprep.subr.bf16.mxu1 %v4463_v26 }
 0x1a4   :  { %1817 = vmatpush1.bf16.msra.mxu1 %v4465_v27 }
 0x1a5   :  { %1818 = vmatprep.subr.bf16.mxu1 %v4466_v28 }
 0x1a8   :  { %1819 = vmatpush1.bf16.msra.mxu1 %v4468_v30  ;;  %v4490_v30 = vld [vmem:[%s6091_s3 + $0x1bc] ss:$8 sps:$4 sm:$0xff]  }
 0x1a9   :  { %1820 = vmatprep.subr.bf16.mxu1 %v4469_v31 }
 0x1aa   :  { %3661 = vmatmul.mubr.msk.bf16.gmra.mrb[16].mxu0 %vm142_vm1, %v4841_v32  ;;  %v5169_v32 = vshrl.u32 %v1276_v29, 7 }
 0x1ab   :  { %1155 = vmatprep.mubr.bf16.mxu0 %v4707_v1 }
 0x1ac   :  { %v1278_v35 = vsub.s32 0, %v5169_v32  ;;  %1821 = vmatpush1.bf16.msra.mxu1 %v4471_v33  ;;  %v4492_v33 = vld [vmem:[%s6091_s3 + $0x1b8] ss:$8 sps:$4 sm:$0xff]  }
 0x1ad   :  { %1822 = vmatprep.subr.bf16.mxu1 %v4472_v39 }
 0x1ae   :  { %v5181_v37 = vrot.slane %v1274_v34, %v1278_v35 }
 0x1b2   :  { %3662 = vmatmul.mubr.msk.bf16.gmra.mrb[20].mxu0 %vm142_vm1, %v4854_v36  ;;  %v1282_v36 = vsub.s32 1, %v5169_v32  ;;  %v4677_v32 = vld [vmem:[%s6093_s5 + $0x78] sm:$0xff]  }
 0x1b3   :  { %1165 = vmatprep.mubr.bf16.mxu0 %v4707_v1 }
 0x1b4   :  { %v5185_v38 = vrot.slane %v1274_v34, %v1282_v36 }
 0x1ba   :  { %3663 = vmatmul.mubr.msk.bf16.gmra.mrb[24].mxu0 %vm142_vm1, %v4867_v40  ;;  %v4474_v40 = vld [vmem:[%s6091_s3 + $0x158] ss:$8 sps:$4 sm:$0xff]  }
 0x1bb   :  { %1175 = vmatprep.mubr.bf16.mxu0 %v4707_v1  ;;  %1823 = vmatpush1.bf16.msra.mxu1 %v4474_v40 }
 0x1bc   :  { %1824 = vmatprep.subr.bf16.mxu1 %v4475_v46 }
 0x1bf   :  { %1825 = vmatpush1.bf16.msra.mxu1 %v4477_v47 }
 0x1c0   :  { %1826 = vmatprep.subr.bf16.mxu1 %v4478_v55 }
 0x1c2   :  { %3664 = vmatmul.mubr.msk.bf16.gmra.mrb[28].mxu0 %vm142_vm1, %v4880_v44 }
 0x1c3   :  { %1185 = vmatprep.mubr.bf16.mxu0 %v4707_v1  ;;  %1827 = vmatpush1.bf16.msra.mxu1 %v4480_v57  ;;  %v4497_v57 = vld [vmem:[%s6091_s3 + $0x4] ss:$8 sps:$4 sm:$0xff]  }
 0x1c4   :  { %1828 = vmatprep.subr.bf16.mxu1 %v4481_v2 }
 0x1c7   :  { %1829 = vmatpush1.bf16.msra.mxu1 %v4483_v5 }
 0x1c8   :  { %1830 = vmatprep.subr.bf16.mxu1 %v4484_v11 }
 0x1ca   :  { %3665 = vmatmul.mubr.msk.bf16.gmra.mrb[32].mxu0 %vm142_vm1, %v4893_v48 }
 0x1cb   :  { %1195 = vmatprep.mubr.bf16.mxu0 %v4707_v1  ;;  %1831 = vmatpush1.bf16.msra.mxu1 %v4486_v13 }
 0x1cc   :  { %1832 = vmatprep.subr.bf16.mxu1 %v4487_v21 }
 0x1cf   :  { %1833 = vmatpush1.bf16.msra.mxu1 %v4489_v22 }
 0x1d0   :  { %1834 = vmatprep.subr.bf16.mxu1 %v4490_v30 }
 0x1d2   :  { %3666 = vmatmul.mubr.msk.bf16.gmra.mrb[36].mxu0 %vm142_vm1, %v4906_v52 }
 0x1d3   :  { %1205 = vmatprep.mubr.bf16.mxu0 %v4707_v1  ;;  %1835 = vmatpush1.bf16.msra.mxu1 %v4492_v33 }
 0x1da   :  { %3667 = vmatmul.mubr.msk.bf16.gmra.mrb[40].mxu0 %vm142_vm1, %v3607_v9 }
 0x1db   :  { %1215 = vmatprep.mubr.bf16.mxu0 %v4707_v1 }
 0x1e2   :  { %3668 = vmatmul.mubr.msk.bf16.gmra.mrb[44].mxu0 %vm142_vm1, %v3651_v17 }
 0x25d   :  { %v1107_v41 = vpop.f32.mrb[0].mxu0 }
 0x25e   :  { %v1286_v42 = vadd.f32 %v5181_v37, %v1107_v41  ;;  %v1109_v43 = vpop.f32.mrb[1].mxu0 }
 0x25f   :  { %v1287_v44 = vadd.f32 %v5185_v38, %v1109_v43  ;;  %v1111_v45 = vpop.f32.mrb[2].mxu0 }
 0x260   :  { %v1288_v48 = vadd.f32 %v5181_v37, %v1111_v45  ;;  %v1113_v49 = vpop.f32.mrb[3].mxu0  ;;  %v1334_v51 = vmax.f32 %v1286_v42, 0.0  ;;  %v3697_v42 = vld [vmem:[%s6091_s3 + $0x1c8] sm:$0x77] }
 0x261   :  { %v1289_v50 = vadd.f32 %v5185_v38, %v1113_v49  ;;  %v1335_v53 = vmax.f32 %v1287_v44, 0.0  ;;  %v3727_v46 = vcombine.high %v3697_v42, %v3697_v42  ;;  %v3726_v47 = vcombine.low %v3697_v42, %v3697_v42 }
 0x262   :  { %v1336_v52 = vmax.f32 %v1288_v48, 0.0 }
 0x263   :  { %v1337_v54 = vmax.f32 %v1289_v50, 0.0  ;;  %3728 = vmatprep.subr.msk.bf16.mxu1 %vm1801_vm2, %v3727_v46 }
 0x264   :  { %v5206_v56 = vmax.f32 %v1334_v51, %v1336_v52  ;;  %v1803_v51 = vsel %vm1801_vm2, %v3726_v47, 0 }
 0x265   :  { %v5211_v58 = vmax.f32 %v1335_v53, %v1337_v54  ;;  %v1117_v59 = vpop.f32.mrb[4].mxu0  ;;  %1837 = vmatpush1.bf16.msra.mxu1 %v1803_v51 }
 0x266   :  { %v1290_v60 = vadd.f32 %v5181_v37, %v1117_v59  ;;  %v1119_v61 = vpop.f32.mrb[5].mxu0  ;;  %2044 = vmatprep.subr.bf16.mxu1 %v4497_v57 }
 0x267   :  { %v1291_v62 = vadd.f32 %v5185_v38, %v1119_v61  ;;  %v1121_v63 = vpop.f32.mrb[6].mxu0  ;;  %v4314_v0 = vpack.i.bf16 %v5211_v58, %v5206_v56 }
 0x268   :  { %v1292_v3 = vadd.f32 %v5181_v37, %v1121_v63  ;;  %v1123_v4 = vpop.f32.mrb[7].mxu0  ;;  %v1338_v7 = vmax.f32 %v1290_v60, 0.0 }
 0x269   :  { %v1293_v6 = vadd.f32 %v5185_v38, %v1123_v4  ;;  %4315 = vrot.lane.b32.xlu0 %v4314_v0, %s4708_s23  ;;  %v1339_v9 = vmax.f32 %v1291_v62, 0.0 }
 0x26a   :  { %v1340_v8 = vmax.f32 %v1292_v3, 0.0 }
 0x26b   :  { %v1341_v10 = vmax.f32 %v1293_v6, 0.0 }
 0x26c   :  { %v5229_v12 = vmax.f32 %v1338_v7, %v1340_v8 }
 0x26d   :  { %v5234_v14 = vmax.f32 %v1339_v9, %v1341_v10  ;;  %v1127_v15 = vpop.f32.mrb[8].mxu0 }
 0x26e   :  { %v1294_v16 = vadd.f32 %v5181_v37, %v1127_v15  ;;  %v1129_v17 = vpop.f32.mrb[9].mxu0 }
 0x26f   :  { %v1295_v18 = vadd.f32 %v5185_v38, %v1129_v17  ;;  %v1131_v19 = vpop.f32.mrb[10].mxu0  ;;  %v4319_v20 = vpack.i.bf16 %v5234_v14, %v5229_v12 }
 0x270   :  { %v1296_v23 = vadd.f32 %v5181_v37, %v1131_v19  ;;  %v1133_v24 = vpop.f32.mrb[11].mxu0  ;;  %v1342_v26 = vmax.f32 %v1294_v16, 0.0 }
 0x271   :  { %v1297_v25 = vadd.f32 %v5185_v38, %v1133_v24  ;;  %4320 = vrot.lane.b32.xlu0 %v4319_v20, %s4708_s23  ;;  %v1343_v28 = vmax.f32 %v1295_v18, 0.0 }
 0x272   :  { %v1344_v27 = vmax.f32 %v1296_v23, 0.0 }
 0x273   :  { %v1345_v29 = vmax.f32 %v1297_v25, 0.0 }
 0x274   :  { %v5252_v31 = vmax.f32 %v1342_v26, %v1344_v27 }
 0x275   :  { %v5257_v34 = vmax.f32 %v1343_v28, %v1345_v29  ;;  %v1137_v39 = vpop.f32.mrb[12].mxu0 }
 0x276   :  { %v1298_v40 = vadd.f32 %v5181_v37, %v1137_v39  ;;  %v1139_v41 = vpop.f32.mrb[13].mxu0 }
 0x277   :  { %v1299_v43 = vadd.f32 %v5185_v38, %v1139_v41  ;;  %v1141_v44 = vpop.f32.mrb[14].mxu0  ;;  %v4324_v45 = vpack.i.bf16 %v5257_v34, %v5252_v31 }
 0x278   :  { %v1300_v48 = vadd.f32 %v5181_v37, %v1141_v44  ;;  %v1143_v49 = vpop.f32.mrb[15].mxu0  ;;  %v1346_v52 = vmax.f32 %v1298_v40, 0.0 }
 0x279   :  { %v1301_v50 = vadd.f32 %v5185_v38, %v1143_v49  ;;  %4325 = vrot.lane.b32.xlu1 %v4324_v45, %s4708_s23  ;;  %v1347_v54 = vmax.f32 %v1299_v43, 0.0 }
 0x27a   :  { %v1348_v53 = vmax.f32 %v1300_v48, 0.0 }
 0x27b   :  { %v1349_v55 = vmax.f32 %v1301_v50, 0.0 }
 0x27c   :  { %v5274_v59 = vmax.f32 %v1346_v52, %v1348_v53 }
 0x27d   :  { %v5276_v60 = vmax.f32 %v1347_v54, %v1349_v55  ;;  %v1147_v61 = vpop.f32.mrb[16].mxu0 }
 0x27e   :  { %v1302_v62 = vadd.f32 %v5181_v37, %v1147_v61  ;;  %v1149_v63 = vpop.f32.mrb[17].mxu0 }
 0x27f   :  { %v1303_v0 = vadd.f32 %v5185_v38, %v1149_v63  ;;  %v1151_v2 = vpop.f32.mrb[18].mxu0  ;;  %v4329_v3 = vpack.i.bf16 %v5276_v60, %v5274_v59 }
 0x280   :  { %v1304_v4 = vadd.f32 %v5181_v37, %v1151_v2  ;;  %v1153_v5 = vpop.f32.mrb[19].mxu0  ;;  %v1350_v7 = vmax.f32 %v1302_v62, 0.0 }
 0x281   :  { %v1305_v6 = vadd.f32 %v5185_v38, %v1153_v5  ;;  %4330 = vrot.lane.b32.xlu1 %v4329_v3, %s4708_s23  ;;  %v1351_v9 = vmax.f32 %v1303_v0, 0.0 }
 0x282   :  { %v1352_v8 = vmax.f32 %v1304_v4, 0.0 }
 0x283   :  { %v1353_v10 = vmax.f32 %v1305_v6, 0.0 }
 0x284   :  { %v5285_v11 = vmax.f32 %v1350_v7, %v1352_v8 }
 0x285   :  { %v5287_v13 = vmax.f32 %v1351_v9, %v1353_v10  ;;  %v1157_v15 = vpop.f32.mrb[20].mxu0 }
 0x286   :  { %v1306_v16 = vadd.f32 %v5181_v37, %v1157_v15  ;;  %v1159_v17 = vpop.f32.mrb[21].mxu0 }
 0x287   :  { %v1307_v18 = vadd.f32 %v5185_v38, %v1159_v17  ;;  %v1161_v19 = vpop.f32.mrb[22].mxu0  ;;  %v4334_v20 = vpack.i.bf16 %v5287_v13, %v5285_v11 }
 0x288   :  { %v1308_v21 = vadd.f32 %v5181_v37, %v1161_v19  ;;  %v1163_v22 = vpop.f32.mrb[23].mxu0  ;;  %v1354_v24 = vmax.f32 %v1306_v16, 0.0 }
 0x289   :  { %v1309_v23 = vadd.f32 %v5185_v38, %v1163_v22  ;;  %4335 = vrot.lane.b32.xlu0 %v4334_v20, %s4708_s23  ;;  %v1355_v26 = vmax.f32 %v1307_v18, 0.0 }
 0x28a   :  { %v1356_v25 = vmax.f32 %v1308_v21, 0.0 }
 0x28b   :  { %v1357_v27 = vmax.f32 %v1309_v23, 0.0 }
 0x28c   :  { %v5296_v28 = vmax.f32 %v1354_v24, %v1356_v25 }
 0x28d   :  { %v5298_v29 = vmax.f32 %v1355_v26, %v1357_v27  ;;  %v1167_v30 = vpop.f32.mrb[24].mxu0 }
 0x28e   :  { %v1310_v33 = vadd.f32 %v5181_v37, %v1167_v30  ;;  %v1169_v39 = vpop.f32.mrb[25].mxu0 }
 0x28f   :  { %v1311_v40 = vadd.f32 %v5185_v38, %v1169_v39  ;;  %v1171_v41 = vpop.f32.mrb[26].mxu0  ;;  %v4339_v42 = vpack.i.bf16 %v5298_v29, %v5296_v28 }
 0x290   :  { %v1312_v43 = vadd.f32 %v5181_v37, %v1171_v41  ;;  %v1173_v44 = vpop.f32.mrb[27].mxu0  ;;  %v1358_v46 = vmax.f32 %v1310_v33, 0.0 }
 0x291   :  { %v1313_v45 = vadd.f32 %v5185_v38, %v1173_v44  ;;  %4340 = vrot.lane.b32.xlu1 %v4339_v42, %s4708_s23  ;;  %v1359_v48 = vmax.f32 %v1311_v40, 0.0 }
 0x292   :  { %v1360_v47 = vmax.f32 %v1312_v43, 0.0 }
 0x293   :  { %v1361_v49 = vmax.f32 %v1313_v45, 0.0 }
 0x294   :  { %v5307_v50 = vmax.f32 %v1358_v46, %v1360_v47 }
 0x295   :  { %v5309_v51 = vmax.f32 %v1359_v48, %v1361_v49  ;;  %v1177_v52 = vpop.f32.mrb[28].mxu0 }
 0x296   :  { %v1314_v53 = vadd.f32 %v5181_v37, %v1177_v52  ;;  %v1179_v54 = vpop.f32.mrb[29].mxu0 }
 0x297   :  { %v1315_v55 = vadd.f32 %v5185_v38, %v1179_v54  ;;  %v1181_v57 = vpop.f32.mrb[30].mxu0  ;;  %v4344_v61 = vpack.i.bf16 %v5309_v51, %v5307_v50 }
 0x298   :  { %v1316_v62 = vadd.f32 %v5181_v37, %v1181_v57  ;;  %v1183_v63 = vpop.f32.mrb[31].mxu0  ;;  %v1362_v2 = vmax.f32 %v1314_v53, 0.0 }
 0x299   :  { %v1317_v0 = vadd.f32 %v5185_v38, %v1183_v63  ;;  %4345 = vrot.lane.b32.xlu0 %v4344_v61, %s4708_s23  ;;  %v1363_v4 = vmax.f32 %v1315_v55, 0.0 }
 0x29a   :  { %v1364_v3 = vmax.f32 %v1316_v62, 0.0 }
 0x29b   :  { %v1365_v5 = vmax.f32 %v1317_v0, 0.0 }
 0x29c   :  { %v5318_v6 = vmax.f32 %v1362_v2, %v1364_v3 }
 0x29d   :  { %v5320_v7 = vmax.f32 %v1363_v4, %v1365_v5  ;;  %v1187_v8 = vpop.f32.mrb[32].mxu0 }
 0x29e   :  { %v1318_v9 = vadd.f32 %v5181_v37, %v1187_v8  ;;  %v1189_v10 = vpop.f32.mrb[33].mxu0 }
 0x29f   :  { %v1319_v15 = vadd.f32 %v5185_v38, %v1189_v10  ;;  %v1191_v16 = vpop.f32.mrb[34].mxu0  ;;  %v4349_v17 = vpack.i.bf16 %v5320_v7, %v5318_v6 }
 0x2a0   :  { %v1320_v18 = vadd.f32 %v5181_v37, %v1191_v16  ;;  %v1193_v19 = vpop.f32.mrb[35].mxu0  ;;  %v1366_v21 = vmax.f32 %v1318_v9, 0.0 }
 0x2a1   :  { %v1321_v20 = vadd.f32 %v5185_v38, %v1193_v19  ;;  %4350 = vrot.lane.b32.xlu1 %v4349_v17, %s4708_s23  ;;  %v1367_v23 = vmax.f32 %v1319_v15, 0.0 }
 0x2a2   :  { %v1368_v22 = vmax.f32 %v1320_v18, 0.0 }
 0x2a3   :  { %v1369_v24 = vmax.f32 %v1321_v20, 0.0 }
 0x2a4   :  { %v5329_v25 = vmax.f32 %v1366_v21, %v1368_v22 }
 0x2a5   :  { %v5331_v26 = vmax.f32 %v1367_v23, %v1369_v24  ;;  %v1197_v27 = vpop.f32.mrb[36].mxu0 }
 0x2a6   :  { %v1322_v30 = vadd.f32 %v5181_v37, %v1197_v27  ;;  %v1199_v33 = vpop.f32.mrb[37].mxu0 }
 0x2a7   :  { %v1323_v39 = vadd.f32 %v5185_v38, %v1199_v33  ;;  %v1201_v40 = vpop.f32.mrb[38].mxu0  ;;  %v4354_v41 = vpack.i.bf16 %v5331_v26, %v5329_v25 }
 0x2a8   :  { %v1324_v42 = vadd.f32 %v5181_v37, %v1201_v40  ;;  %v1203_v43 = vpop.f32.mrb[39].mxu0  ;;  %v1370_v45 = vmax.f32 %v1322_v30, 0.0 }
 0x2a9   :  { %v1325_v44 = vadd.f32 %v5185_v38, %v1203_v43  ;;  %4355 = vrot.lane.b32.xlu0 %v4354_v41, %s4708_s23  ;;  %v1371_v47 = vmax.f32 %v1323_v39, 0.0 }
 0x2aa   :  { %v1372_v46 = vmax.f32 %v1324_v42, 0.0 }
 0x2ab   :  { %v1373_v48 = vmax.f32 %v1325_v44, 0.0 }
 0x2ac   :  { %v5340_v49 = vmax.f32 %v1370_v45, %v1372_v46 }
 0x2ad   :  { %v5342_v52 = vmax.f32 %v1371_v47, %v1373_v48  ;;  %v1207_v53 = vpop.f32.mrb[40].mxu0 }
 0x2ae   :  { %v1326_v54 = vadd.f32 %v5181_v37, %v1207_v53  ;;  %v1209_v55 = vpop.f32.mrb[41].mxu0 }
 0x2af   :  { %v1327_v57 = vadd.f32 %v5185_v38, %v1209_v55  ;;  %v1211_v61 = vpop.f32.mrb[42].mxu0  ;;  %v4359_v62 = vpack.i.bf16 %v5342_v52, %v5340_v49 }
 0x2b0   :  { %v1328_v63 = vadd.f32 %v5181_v37, %v1211_v61  ;;  %v1213_v0 = vpop.f32.mrb[43].mxu0  ;;  %v1374_v3 = vmax.f32 %v1326_v54, 0.0 }
 0x2b1   :  { %v1329_v2 = vadd.f32 %v5185_v38, %v1213_v0  ;;  %4360 = vrot.lane.b32.xlu1 %v4359_v62, %s4708_s23  ;;  %v1375_v5 = vmax.f32 %v1327_v57, 0.0 }
 0x2b2   :  { %v1376_v4 = vmax.f32 %v1328_v63, 0.0 }
 0x2b3   :  { %v1377_v8 = vmax.f32 %v1329_v2, 0.0 }
 0x2b4   :  { %v5351_v9 = vmax.f32 %v1374_v3, %v1376_v4 }
 0x2b5   :  { %v5353_v10 = vmax.f32 %v1375_v5, %v1377_v8  ;;  %v1217_v15 = vpop.f32.mrb[44].mxu0 }
 0x2b6   :  { %v1330_v16 = vadd.f32 %v5181_v37, %v1217_v15  ;;  %v1219_v17 = vpop.f32.mrb[45].mxu0 }
 0x2b7   :  { %v1331_v18 = vadd.f32 %v5185_v38, %v1219_v17  ;;  %v1221_v19 = vpop.f32.mrb[46].mxu0  ;;  %v4364_v20 = vpack.i.bf16 %v5353_v10, %v5351_v9 }
 0x2b8   :  { %v1332_v21 = vadd.f32 %v5181_v37, %v1221_v19  ;;  %v1223_v22 = vpop.f32.mrb[47].mxu0  ;;  %v1378_v24 = vmax.f32 %v1330_v16, 0.0  ;;  %v4500_v19 = vld [vmem:[%s6091_s3 + $0x14] ss:$8 sps:$4 sm:$0xff]  }
 0x2b9   :  { %v1333_v23 = vadd.f32 %v5185_v38, %v1223_v22  ;;  %4365 = vrot.lane.b32.xlu0 %v4364_v20, %s4708_s23  ;;  %v1379_v30 = vmax.f32 %v1331_v18, 0.0  ;;  %v4498_v22 = vld [vmem:[%s6091_s3 + $0x10] ss:$8 sps:$4 sm:$0xff]  }
 0x2ba   :  { %v1380_v27 = vmax.f32 %v1332_v21, 0.0 }
 0x2bb   :  { %v1381_v33 = vmax.f32 %v1333_v23, 0.0 }
 0x2bc   :  { %v5362_v39 = vmax.f32 %v1378_v24, %v1380_v27  ;;  %v4503_v27 = vld [vmem:[%s6091_s3 + $0x24] ss:$8 sps:$4 sm:$0xff]  }
 0x2bd   :  { %v5364_v40 = vmax.f32 %v1379_v30, %v1381_v33  ;;  %v4501_v33 = vld [vmem:[%s6091_s3 + $0x20] ss:$8 sps:$4 sm:$0xff]  }
 0x2bf   :  { %v4369_v41 = vpack.i.bf16 %v5364_v40, %v5362_v39 }
 0x2c1   :  { %4370 = vrot.lane.b32.xlu1 %v4369_v41, %s4708_s23 }
 0x2db   :  { %v4316_v42 = vpop.permute.xlu0 %4315 }
 0x2dc   :  { %v4318_v45 = vunpack.i.h.bf16 %v4316_v42  ;;  %v4317_v46 = vunpack.i.l.bf16 %v4316_v42 }
 0x2de   :  { %v1479_v54 = vsel %vm1478_vm3, %v4317_v46, %v4318_v45  ;;  %v1516_v62 = vmax.f32 %v5211_v58, %v4318_v45 }
 0x2df   :  { %v1515_v3 = vmax.f32 %v5206_v56, %v1479_v54 }
 0x2e3   :  { %v4321_v37 = vpop.permute.xlu0 %4320 }
 0x2e4   :  { %v4323_v43 = vunpack.i.h.bf16 %v4321_v37  ;;  %v4322_v44 = vunpack.i.l.bf16 %v4321_v37 }
 0x2e6   :  { %v1480_v47 = vsel %vm1478_vm3, %v4322_v44, %v4323_v43  ;;  %v1518_v55 = vmax.f32 %v5234_v14, %v4323_v43  ;;  %v4506_v43 = vld [vmem:[%s6091_s3 + $0x34] ss:$8 sps:$4 sm:$0xff]  }
 0x2e7   :  { %v1517_v57 = vmax.f32 %v5229_v12, %v1480_v47 }
 0x2e8   :  { %v5376_v4 = vpack.c.bf16 %v1518_v55, %v1516_v62 }
 0x2e9   :  { %v5383_v16 = vpack.c.bf16 %v1517_v57, %v1515_v3  ;;  %v4512_v57 = vld [vmem:[%s6091_s3 + $0x54] ss:$8 sps:$4 sm:$0xff]   ;;  %v4515_v3 = vld [vmem:[%s6091_s3 + $0x64] ss:$8 sps:$4 sm:$0xff]  }
 0x2ea   :  { %v1624_v56 = vrot.slane %v5376_v4, 4 }
 0x2eb   :  { %v4326_v38 = vpop.permute.xlu1 %4325 }
 0x2ec   :  { %v4328_v48 = vunpack.i.h.bf16 %v4326_v38  ;;  %v4327_v53 = vunpack.i.l.bf16 %v4326_v38 }
 0x2ee   :  { %v1481_v63 = vsel %vm1478_vm3, %v4327_v53, %v4328_v48  ;;  %v1520_v5 = vmax.f32 %v5257_v34, %v4328_v48  ;;  %v4495_v34 = vld [vmem:[%s6091_s3] ss:$8 sps:$4 sm:$0xff]   ;;  %v4504_v48 = vld [vmem:[%s6091_s3 + $0x30] ss:$8 sps:$4 sm:$0xff]  }
 0x2ef   :  { %v1519_v14 = vmax.f32 %v5252_v31, %v1481_v63  ;;  %v1621_v31 = vrot.slane %v5383_v16, 4  ;;  %v4510_v63 = vld [vmem:[%s6091_s3 + $0x50] ss:$8 sps:$4 sm:$0xff]  }
 0x2f3   :  { %v4331_v61 = vpop.permute.xlu1 %4330 }
 0x2f4   :  { %v4333_v0 = vunpack.i.h.bf16 %v4331_v61  ;;  %v4332_v2 = vunpack.i.l.bf16 %v4331_v61 }
 0x2f6   :  { %v1522_v8 = vmax.f32 %v5276_v60, %v4333_v0  ;;  %v1482_v15 = vsel %vm1478_vm3, %v4332_v2, %v4333_v0 }
 0x2f7   :  { %v1521_v12 = vmax.f32 %v5274_v59, %v1482_v15 }
 0x2f8   :  { %v5385_v58 = vpack.c.bf16 %v1522_v8, %v1520_v5  ;;  %v4513_v8 = vld [vmem:[%s6091_s3 + $0x60] ss:$8 sps:$4 sm:$0xff]  }
 0x2f9   :  { %v5387_v17 = vpack.c.bf16 %v1521_v12, %v1519_v14 }
 0x2fa   :  { %v1625_v18 = vrot.slane %v5385_v58, 4 }
 0x2fb   :  { %v1622_v59 = vrot.slane %v5387_v17, 4  ;;  %v4336_v20 = vpop.permute.xlu0 %4335 }
 0x2fc   :  { %v1626_v60 = vsel %vm1620_vm4, %v1624_v56, %v1625_v18  ;;  %v4338_v23 = vunpack.i.h.bf16 %v4336_v20  ;;  %v4337_v24 = vunpack.i.l.bf16 %v4336_v20  ;;  %v4518_v56 = vld [vmem:[%s6091_s3 + $0x74] ss:$8 sps:$4 sm:$0xff]  }
 0x2fd   :  { %3729 = vmatprep.mubr.msk.bf16.mxu1 %vm1788_vm5, %v1626_v60  ;;  %v1623_v21 = vsel %vm1620_vm4, %v1621_v31, %v1622_v59 }
 0x2fe   :  { %1841 = vmatmul.mubr.bf16.vlgmr.msra.gmra.mrb[0].mxu1 %v1623_v21  ;;  %v1483_v41 = vsel %vm1478_vm3, %v4337_v24, %v4338_v23  ;;  %v1524_v44 = vmax.f32 %v5287_v13, %v4338_v23  ;;  %v4509_v13 = vld [vmem:[%s6091_s3 + $0x44] ss:$8 sps:$4 sm:$0xff]   ;;  %v4524_v23 = vld [vmem:[%s6091_s3 + $0x94] ss:$8 sps:$4 sm:$0xff]  }
 0x2ff   :  { %2045 = vmatpush1.bf16.msra.mxu1 %v4495_v34  ;;  %v1523_v46 = vmax.f32 %v5285_v11, %v1483_v41  ;;  %v4507_v11 = vld [vmem:[%s6091_s3 + $0x40] ss:$8 sps:$4 sm:$0xff]  }
 0x300   :  { %2046 = vmatprep.subr.bf16.mxu1 %v4500_v19  ;;  %v4516_v19 = vld [vmem:[%s6091_s3 + $0x70] ss:$8 sps:$4 sm:$0xff]  }
 0x303   :  { %2047 = vmatpush1.bf16.msra.mxu1 %v4498_v22  ;;  %v4341_v30 = vpop.permute.xlu1 %4340 }
 0x304   :  { %v4343_v42 = vunpack.i.h.bf16 %v4341_v30  ;;  %v4342_v37 = vunpack.i.l.bf16 %v4341_v30  ;;  %2048 = vmatprep.subr.bf16.mxu1 %v4503_v27  ;;  %v4522_v30 = vld [vmem:[%s6091_s3 + $0x90] ss:$8 sps:$4 sm:$0xff]  }
 0x306   :  { %v1526_v38 = vmax.f32 %v5298_v29, %v4343_v42  ;;  %v1484_v45 = vsel %vm1478_vm3, %v4342_v37, %v4343_v42  ;;  %v4527_v42 = vld [vmem:[%s6091_s3 + $0xa4] ss:$8 sps:$4 sm:$0xff]  }
 0x307   :  { %v1525_v47 = vmax.f32 %v5296_v28, %v1484_v45  ;;  %2049 = vmatpush1.bf16.msra.mxu1 %v4501_v33 }
 0x308   :  { %v5423_v53 = vpack.c.bf16 %v1526_v38, %v1524_v44  ;;  %2050 = vmatprep.subr.bf16.mxu1 %v4506_v43  ;;  %v4525_v43 = vld [vmem:[%s6091_s3 + $0xa0] ss:$8 sps:$4 sm:$0xff]  }
 0x309   :  { %v5428_v54 = vpack.c.bf16 %v1525_v47, %v1523_v46  ;;  %v4530_v46 = vld [vmem:[%s6091_s3 + $0xb4] ss:$8 sps:$4 sm:$0xff]  }
 0x30a   :  { %v1629_v29 = vrot.slane %v5423_v53, 4 }
 0x30b   :  { %2051 = vmatpush1.bf16.msra.mxu1 %v4504_v48  ;;  %v1627_v28 = vrot.slane %v5428_v54, 4  ;;  %v4346_v61 = vpop.permute.xlu0 %4345 }
 0x30c   :  { %v5436_v55 = vsel %vm1620_vm4, %v1625_v18, %v1629_v29  ;;  %2052 = vmatprep.subr.bf16.mxu1 %v4509_v13  ;;  %v4348_v0 = vunpack.i.h.bf16 %v4346_v61  ;;  %v4347_v2 = vunpack.i.l.bf16 %v4346_v61 }
 0x30d   :  { %3730 = vmatprep.mubr.msk.bf16.mxu1 %vm1788_vm5, %v5436_v55  ;;  %v5444_v62 = vsel %vm1620_vm4, %v1622_v59, %v1627_v28 }
 0x30e   :  { %1851 = vmatmul.mubr.bf16.gmra.mrb[4].mxu1 %v5444_v62  ;;  %v1485_v15 = vsel %vm1478_vm3, %v4347_v2, %v4348_v0  ;;  %v1528_v18 = vmax.f32 %v5309_v51, %v4348_v0  ;;  %v4521_v51 = vld [vmem:[%s6091_s3 + $0x84] ss:$8 sps:$4 sm:$0xff]   ;;  %v4536_v0 = vld [vmem:[%s6091_s3 + $0xd4] ss:$8 sps:$4 sm:$0xff]  }
 0x30f   :  { %2053 = vmatpush1.bf16.msra.mxu1 %v4507_v11  ;;  %v1527_v59 = vmax.f32 %v5307_v50, %v1485_v15  ;;  %v4519_v50 = vld [vmem:[%s6091_s3 + $0x80] ss:$8 sps:$4 sm:$0xff]  }
 0x310   :  { %2054 = vmatprep.subr.bf16.mxu1 %v4512_v57 }
 0x313   :  { %2055 = vmatpush1.bf16.msra.mxu1 %v4510_v63  ;;  %v4351_v5 = vpop.permute.xlu1 %4350 }
 0x314   :  { %v4353_v14 = vunpack.i.h.bf16 %v4351_v5  ;;  %v4352_v12 = vunpack.i.l.bf16 %v4351_v5  ;;  %2056 = vmatprep.subr.bf16.mxu1 %v4515_v3  ;;  %v1579_v3 = vld [vmem:[%s6091_s3 + $0xe0] sm:$0x77]  ;;  %v4534_v5 = vld [vmem:[%s6091_s3 + $0xd0] ss:$8 sps:$4 sm:$0xff]  }
 0x315   :  { %v3761_v15 = vcombine.low %v1579_v3, %v1579_v3 }
 0x316   :  { %v1530_v34 = vmax.f32 %v5320_v7, %v4353_v14  ;;  %v1486_v31 = vsel %vm1478_vm3, %v4352_v12, %v4353_v14  ;;  %v4541_v12 = vld [vmem:[%s6091_s3 + $0x1d4] ss:$8 sps:$4 sm:$0xff]  }
 0x317   :  { %v1529_v60 = vmax.f32 %v5318_v6, %v1486_v31  ;;  %2057 = vmatpush1.bf16.msra.mxu1 %v4513_v8  ;;  %v3762_v8 = vcombine.high %v1579_v3, %v1579_v3  ;;  %v2039_v14 = vsel %vm1801_vm2, %v3761_v15, 0  ;;  %v4545_v31 = vld [vmem:[%s6091_s3 + $0x1f0] ss:$8 sps:$4 sm:$0xff]   ;;  %v4591_v3 = vld [vmem:[%s6091_s3 + $0x2dc] ss:$8 sps:$4 sm:$0xff]  }
 0x318   :  { %v5468_v20 = vpack.c.bf16 %v1530_v34, %v1528_v18  ;;  %2058 = vmatprep.subr.bf16.mxu1 %v4518_v56  ;;  %v4544_v56 = vld [vmem:[%s6091_s3 + $0x1e4] ss:$8 sps:$4 sm:$0xff]   ;;  %v4542_v18 = vld [vmem:[%s6091_s3 + $0x1e0] ss:$8 sps:$4 sm:$0xff]   ;;  %v4547_v34 = vld [vmem:[%s6091_s3 + $0x1f4] ss:$8 sps:$4 sm:$0xff]  }
 0x319   :  { %v5473_v21 = vpack.c.bf16 %v1529_v60, %v1527_v59  ;;  %v4548_v59 = vld [vmem:[%s6091_s3 + $0x200] ss:$8 sps:$4 sm:$0xff]   ;;  %v4553_v60 = vld [vmem:[%s6091_s3 + $0x214] ss:$8 sps:$4 sm:$0xff]  }
 0x31a   :  { %v1633_v7 = vrot.slane %v5468_v20, 4  ;;  %v4597_v15 = vld [vmem:[%s6091_s3 + $0x2fc] ss:$8 sps:$4 sm:$0xff]  }
 0x31b   :  { %2059 = vmatpush1.bf16.msra.mxu1 %v4516_v19  ;;  %v1631_v6 = vrot.slane %v5473_v21, 4  ;;  %v4356_v24 = vpop.permute.xlu0 %4355  ;;  %v4551_v19 = vld [vmem:[%s6091_s3 + $0x210] ss:$8 sps:$4 sm:$0xff]  }
 0x31c   :  { %v5481_v22 = vsel %vm1620_vm4, %v1629_v29, %v1633_v7  ;;  %2060 = vmatprep.subr.bf16.mxu1 %v4521_v51  ;;  %v4358_v33 = vunpack.i.h.bf16 %v4356_v24  ;;  %v4357_v41 = vunpack.i.l.bf16 %v4356_v24  ;;  %v4556_v51 = vld [vmem:[%s6091_s3 + $0x224] ss:$8 sps:$4 sm:$0xff]   ;;  %v4560_v24 = vld [vmem:[%s6091_s3 + $0x240] ss:$8 sps:$4 sm:$0xff]  }
 0x31d   :  { %3731 = vmatprep.mubr.msk.bf16.mxu1 %vm1788_vm5, %v5481_v22  ;;  %v5489_v27 = vsel %vm1620_vm4, %v1627_v28, %v1631_v6  ;;  %v4528_v28 = vld [vmem:[%s6091_s3 + $0xb0] ss:$8 sps:$4 sm:$0xff]  }
 0x31e   :  { %1861 = vmatmul.mubr.bf16.gmra.mrb[8].mxu1 %v5489_v27  ;;  %v1487_v44 = vsel %vm1478_vm3, %v4357_v41, %v4358_v33  ;;  %v1532_v47 = vmax.f32 %v5331_v26, %v4358_v33  ;;  %v4533_v26 = vld [vmem:[%s6091_s3 + $0xc4] ss:$8 sps:$4 sm:$0xff]   ;;  %v4563_v33 = vld [vmem:[%s6091_s3 + $0x250] ss:$8 sps:$4 sm:$0xff]  }
 0x31f   :  { %2061 = vmatpush1.bf16.msra.mxu1 %v4519_v50  ;;  %v1531_v29 = vmax.f32 %v5329_v25, %v1487_v44  ;;  %v4531_v25 = vld [vmem:[%s6091_s3 + $0xc0] ss:$8 sps:$4 sm:$0xff]   ;;  %v4559_v50 = vld [vmem:[%s6091_s3 + $0x234] ss:$8 sps:$4 sm:$0xff]   ;;  %v4568_v41 = vld [vmem:[%s6091_s3 + $0x264] ss:$8 sps:$4 sm:$0xff]  }
 0x320   :  { %2062 = vmatprep.subr.bf16.mxu1 %v4524_v23  ;;  %v4562_v23 = vld [vmem:[%s6091_s3 + $0x244] ss:$8 sps:$4 sm:$0xff]   ;;  %v4572_v44 = vld [vmem:[%s6091_s3 + $0x280] ss:$8 sps:$4 sm:$0xff]  }
 0x323   :  { %2063 = vmatpush1.bf16.msra.mxu1 %v4522_v30  ;;  %v4361_v37 = vpop.permute.xlu1 %4360  ;;  %v4565_v30 = vld [vmem:[%s6091_s3 + $0x254] ss:$8 sps:$4 sm:$0xff]  }
 0x324   :  { %v4363_v38 = vunpack.i.h.bf16 %v4361_v37  ;;  %v4362_v45 = vunpack.i.l.bf16 %v4361_v37  ;;  %2064 = vmatprep.subr.bf16.mxu1 %v4527_v42  ;;  %v4571_v42 = vld [vmem:[%s6091_s3 + $0x274] ss:$8 sps:$4 sm:$0xff]   ;;  %v4569_v37 = vld [vmem:[%s6091_s3 + $0x270] ss:$8 sps:$4 sm:$0xff]  }
 0x326   :  { %v1534_v48 = vmax.f32 %v5342_v52, %v4363_v38  ;;  %v1488_v13 = vsel %vm1478_vm3, %v4362_v45, %v4363_v38  ;;  %v4577_v38 = vld [vmem:[%s6091_s3 + $0x294] ss:$8 sps:$4 sm:$0xff]   ;;  %v4575_v45 = vld [vmem:[%s6091_s3 + $0x290] ss:$8 sps:$4 sm:$0xff]  }
 0x327   :  { %v1533_v11 = vmax.f32 %v5340_v49, %v1488_v13  ;;  %2065 = vmatpush1.bf16.msra.mxu1 %v4525_v43  ;;  %v4574_v43 = vld [vmem:[%s6091_s3 + $0x284] ss:$8 sps:$4 sm:$0xff]  }
 0x328   :  { %v5513_v57 = vpack.c.bf16 %v1534_v48, %v1532_v47  ;;  %2066 = vmatprep.subr.bf16.mxu1 %v4530_v46  ;;  %v4580_v46 = vld [vmem:[%s6091_s3 + $0x2a4] ss:$8 sps:$4 sm:$0xff]   ;;  %v3796_v47 = vld [vmem:[%s6091_s3 + $0x2b0] sm:$0x77]  ;;  %v4578_v48 = vld [vmem:[%s6091_s3 + $0x2a0] ss:$8 sps:$4 sm:$0xff]  }
 0x329   :  { %v5518_v61 = vpack.c.bf16 %v1533_v11, %v1531_v29  ;;  %v3826_v13 = vcombine.high %v3796_v47, %v3796_v47  ;;  %v3825_v29 = vcombine.low %v3796_v47, %v3796_v47  ;;  %v4630_v47 = vld [vmem:[%s6091_s3 + $0x3b0] ss:$8 sps:$4 sm:$0xff]  }
 0x32a   :  { %v1637_v52 = vrot.slane %v5513_v57, 4 }
 0x32b   :  { %2067 = vmatpush1.bf16.msra.mxu1 %v4528_v28  ;;  %v1635_v49 = vrot.slane %v5518_v61, 4  ;;  %v2296_v11 = vsel %vm1801_vm2, %v3825_v29, 0  ;;  %v4585_v28 = vld [vmem:[%s6091_s3 + $0x2bc] ss:$8 sps:$4 sm:$0xff]  }
 0x32c   :  { %v5528_v63 = vsel %vm1620_vm4, %v1633_v7, %v1637_v52  ;;  %2068 = vmatprep.subr.bf16.mxu1 %v4533_v26  ;;  %v4554_v7 = vld [vmem:[%s6091_s3 + $0x220] ss:$8 sps:$4 sm:$0xff]  }
 0x32d   :  { %3732 = vmatprep.mubr.msk.bf16.mxu1 %vm1788_vm5, %v5528_v63  ;;  %v5538_v2 = vsel %vm1620_vm4, %v1631_v6, %v1635_v49  ;;  %v4557_v6 = vld [vmem:[%s6091_s3 + $0x230] ss:$8 sps:$4 sm:$0xff]  }
 0x32e   :  { %1871 = vmatmul.mubr.bf16.gmra.mrb[12].mxu1 %v5538_v2  ;;  %v4583_v26 = vld [vmem:[%s6091_s3 + $0x2b8] ss:$8 sps:$4 sm:$0xff]  }
 0x32f   :  { %2069 = vmatpush1.bf16.msra.mxu1 %v4531_v25  ;;  %3764 = vmatprep.mubr.msk.bf16.mxu1 %vm1788_vm5, %v5376_v4  ;;  %v4539_v4 = vld [vmem:[%s6091_s3 + $0x1d0] ss:$8 sps:$4 sm:$0xff]   ;;  %v4588_v25 = vld [vmem:[%s6091_s3 + $0x2cc] ss:$8 sps:$4 sm:$0xff]  }
 0x330   :  { %2070 = vmatprep.subr.bf16.mxu1 %v4536_v0  ;;  %v4586_v0 = vld [vmem:[%s6091_s3 + $0x2c8] ss:$8 sps:$4 sm:$0xff]  }
 0x333   :  { %2071 = vmatpush1.bf16.msra.mxu1 %v4534_v5  ;;  %v4589_v5 = vld [vmem:[%s6091_s3 + $0x2d8] ss:$8 sps:$4 sm:$0xff]  }
 0x334   :  { %3763 = vmatprep.subr.msk.bf16.mxu1 %vm1801_vm2, %v3762_v8  ;;  %v4592_v8 = vld [vmem:[%s6091_s3 + $0x2e8] ss:$8 sps:$4 sm:$0xff]  }
 0x337   :  { %2073 = vmatpush1.bf16.msra.mxu1 %v2039_v14  ;;  %v4595_v14 = vld [vmem:[%s6091_s3 + $0x2f8] ss:$8 sps:$4 sm:$0xff]  }
 0x338   :  { %2301 = vmatprep.subr.bf16.mxu1 %v4541_v12  ;;  %v4600_v12 = vld [vmem:[%s6091_s3 + $0x30c] ss:$8 sps:$4 sm:$0xff]  }
 0x33a   :  { %2077 = vmatmul.mubr.bf16.vlgmr.msra.gmra.mrb[0].mxu1 %v5383_v16  ;;  %v4550_v16 = vld [vmem:[%s6091_s3 + $0x204] ss:$8 sps:$4 sm:$0xff]  }
 0x33b   :  { %3765 = vmatprep.mubr.msk.bf16.mxu1 %vm1788_vm5, %v5385_v58  ;;  %2302 = vmatpush1.bf16.msra.mxu1 %v4539_v4  ;;  %v4598_v4 = vld [vmem:[%s6091_s3 + $0x308] ss:$8 sps:$4 sm:$0xff]  }
 0x33c   :  { %2303 = vmatprep.subr.bf16.mxu1 %v4544_v56  ;;  %v4603_v56 = vld [vmem:[%s6091_s3 + $0x31c] ss:$8 sps:$4 sm:$0xff]  }
 0x33f   :  { %2304 = vmatpush1.bf16.msra.mxu1 %v4542_v18  ;;  %v4601_v18 = vld [vmem:[%s6091_s3 + $0x318] ss:$8 sps:$4 sm:$0xff]  }
 0x340   :  { %2305 = vmatprep.subr.bf16.mxu1 %v4547_v34  ;;  %v4606_v34 = vld [vmem:[%s6091_s3 + $0x32c] ss:$8 sps:$4 sm:$0xff]  }
 0x342   :  { %2087 = vmatmul.mubr.bf16.gmra.mrb[4].mxu1 %v5387_v17 }
 0x343   :  { %3766 = vmatprep.mubr.msk.bf16.mxu1 %vm1788_vm5, %v5423_v53  ;;  %2306 = vmatpush1.bf16.msra.mxu1 %v4545_v31  ;;  %v4604_v31 = vld [vmem:[%s6091_s3 + $0x328] ss:$8 sps:$4 sm:$0xff]  }
 0x344   :  { %2307 = vmatprep.subr.bf16.mxu1 %v4550_v16  ;;  %v4609_v16 = vld [vmem:[%s6091_s3 + $0x33c] ss:$8 sps:$4 sm:$0xff]  }
 0x347   :  { %2308 = vmatpush1.bf16.msra.mxu1 %v4548_v59  ;;  %v4607_v59 = vld [vmem:[%s6091_s3 + $0x338] ss:$8 sps:$4 sm:$0xff]  }
 0x348   :  { %2309 = vmatprep.subr.bf16.mxu1 %v4553_v60  ;;  %v4612_v60 = vld [vmem:[%s6091_s3 + $0x34c] ss:$8 sps:$4 sm:$0xff]  }
 0x34a   :  { %2097 = vmatmul.mubr.bf16.gmra.mrb[8].mxu1 %v5428_v54 }
 0x34b   :  { %3767 = vmatprep.mubr.msk.bf16.mxu1 %vm1788_vm5, %v5468_v20  ;;  %2310 = vmatpush1.bf16.msra.mxu1 %v4551_v19  ;;  %v4615_v19 = vld [vmem:[%s6091_s3 + $0x35c] ss:$8 sps:$4 sm:$0xff]  }
 0x34c   :  { %2311 = vmatprep.subr.bf16.mxu1 %v4556_v51  ;;  %v4613_v51 = vld [vmem:[%s6091_s3 + $0x358] ss:$8 sps:$4 sm:$0xff]  }
 0x34f   :  { %2312 = vmatpush1.bf16.msra.mxu1 %v4554_v7  ;;  %v4618_v7 = vld [vmem:[%s6091_s3 + $0x36c] ss:$8 sps:$4 sm:$0xff]  }
 0x350   :  { %2313 = vmatprep.subr.bf16.mxu1 %v4559_v50  ;;  %v4616_v50 = vld [vmem:[%s6091_s3 + $0x368] ss:$8 sps:$4 sm:$0xff]  }
 0x352   :  { %2107 = vmatmul.mubr.bf16.gmra.mrb[12].mxu1 %v5473_v21 }
 0x353   :  { %2314 = vmatpush1.bf16.msra.mxu1 %v4557_v6  ;;  %3828 = vmatprep.mubr.msk.bf16.mxu1 %vm1788_vm5, %v5385_v58  ;;  %v4566_v58 = vld [vmem:[%s6091_s3 + $0x260] ss:$8 sps:$4 sm:$0xff]   ;;  %v4621_v6 = vld [vmem:[%s6091_s3 + $0x37c] ss:$8 sps:$4 sm:$0xff]  }
 0x354   :  { %2315 = vmatprep.subr.bf16.mxu1 %v4562_v23  ;;  %v4619_v23 = vld [vmem:[%s6091_s3 + $0x378] ss:$8 sps:$4 sm:$0xff]  }
 0x357   :  { %2316 = vmatpush1.bf16.msra.mxu1 %v4560_v24  ;;  %v4624_v24 = vld [vmem:[%s6091_s3 + $0x38c] ss:$8 sps:$4 sm:$0xff]  }
 0x358   :  { %2317 = vmatprep.subr.bf16.mxu1 %v4565_v30  ;;  %v3860_v30 = vld [vmem:[%s6091_s3 + $0x398] sm:$0x77] }
 0x35b   :  { %2318 = vmatpush1.bf16.msra.mxu1 %v4563_v33  ;;  %v4622_v33 = vld [vmem:[%s6091_s3 + $0x388] ss:$8 sps:$4 sm:$0xff]  }
 0x35c   :  { %2319 = vmatprep.subr.bf16.mxu1 %v4568_v41  ;;  %v3890_v41 = vcombine.high %v3860_v30, %v3860_v30 }
 0x35f   :  { %2320 = vmatpush1.bf16.msra.mxu1 %v4566_v58  ;;  %v3889_v58 = vcombine.low %v3860_v30, %v3860_v30  ;;  %v4671_v30 = vld [vmem:[%s6093_s5 + $0x48] sm:$0xff]  }
 0x360   :  { %2321 = vmatprep.subr.bf16.mxu1 %v4571_v42 }
 0x361   :  { %v2576_v42 = vsel %vm1801_vm2, %v3889_v58, 0  ;;  %v4676_v58 = vld [vmem:[%s6093_s5 + $0x70] sm:$0xff]  }
 0x363   :  { %2322 = vmatpush1.bf16.msra.mxu1 %v4569_v37  ;;  %v4629_v37 = vld [vmem:[%s6091_s3 + $0x3a4] ss:$8 sps:$4 sm:$0xff]  }
 0x364   :  { %2323 = vmatprep.subr.bf16.mxu1 %v4574_v43  ;;  %v4371_v43 = vpop.permute.xlu1 %4370 }
 0x367   :  { %2324 = vmatpush1.bf16.msra.mxu1 %v4572_v44  ;;  %v4627_v44 = vld [vmem:[%s6091_s3 + $0x3a0] ss:$8 sps:$4 sm:$0xff]  }
 0x368   :  { %2325 = vmatprep.subr.bf16.mxu1 %v4577_v38  ;;  %v4632_v38 = vld [vmem:[%s6091_s3 + $0x3b4] ss:$8 sps:$4 sm:$0xff]  }
 0x36b   :  { %2326 = vmatpush1.bf16.msra.mxu1 %v4575_v45  ;;  %v4366_v45 = vpop.permute.xlu0 %4365 }
 0x36c   :  { %2327 = vmatprep.subr.bf16.mxu1 %v4580_v46  ;;  %v4373_v46 = vunpack.i.h.bf16 %v4371_v43 }
 0x36e   :  { %v1538_v29 = vmax.f32 %v5364_v40, %v4373_v46 }
 0x36f   :  { %2328 = vmatpush1.bf16.msra.mxu1 %v4578_v48  ;;  %v4368_v48 = vunpack.i.h.bf16 %v4366_v45 }
 0x370   :  { %3827 = vmatprep.subr.msk.bf16.mxu1 %vm1801_vm2, %v3826_v13  ;;  %v4635_v13 = vld [vmem:[%s6091_s3 + $0x3c4] ss:$8 sps:$4 sm:$0xff]  }
 0x373   :  { %2330 = vmatpush1.bf16.msra.mxu1 %v2296_v11  ;;  %v4372_v11 = vunpack.i.l.bf16 %v4371_v43 }
 0x374   :  { %2581 = vmatprep.subr.bf16.mxu1 %v4585_v28  ;;  %v4367_v28 = vunpack.i.l.bf16 %v4366_v45 }
 0x376   :  { %2334 = vmatmul.mubr.bf16.vlgmr.msra.gmra.mrb[0].mxu1 %v5387_v17  ;;  %v4594_v17 = vld [vmem:[%s6091_s3 + $0x2ec] ss:$8 sps:$4 sm:$0xff]   ;;  %v1489_v40 = vsel %vm1478_vm3, %v4367_v28, %v4368_v48 }
 0x377   :  { %3829 = vmatprep.mubr.msk.bf16.mxu1 %vm1788_vm5, %v5423_v53  ;;  %2582 = vmatpush1.bf16.msra.mxu1 %v4583_v26  ;;  %v4638_v26 = vld [vmem:[%s6091_s3 + $0x3d4] ss:$8 sps:$4 sm:$0xff]  }
 0x378   :  { %2583 = vmatprep.subr.bf16.mxu1 %v4588_v25 }
 0x37b   :  { %2584 = vmatpush1.bf16.msra.mxu1 %v4586_v0  ;;  %v1490_v0 = vsel %vm1478_vm3, %v4372_v11, %v4373_v46 }
 0x37c   :  { %2585 = vmatprep.subr.bf16.mxu1 %v4591_v3  ;;  %v4641_v3 = vld [vmem:[%s6091_s3 + $0x3e4] ss:$8 sps:$4 sm:$0xff]  }
 0x37e   :  { %2344 = vmatmul.mubr.bf16.gmra.mrb[4].mxu1 %v5428_v54 }
 0x37f   :  { %3830 = vmatprep.mubr.msk.bf16.mxu1 %vm1788_vm5, %v5468_v20  ;;  %2586 = vmatpush1.bf16.msra.mxu1 %v4589_v5  ;;  %v1537_v5 = vmax.f32 %v5362_v39, %v1490_v0 }
 0x380   :  { %2587 = vmatprep.subr.bf16.mxu1 %v4594_v17 }
 0x383   :  { %2588 = vmatpush1.bf16.msra.mxu1 %v4592_v8  ;;  %v4644_v8 = vld [vmem:[%s6091_s3 + $0x3f4] ss:$8 sps:$4 sm:$0xff]  }
 0x384   :  { %2589 = vmatprep.subr.bf16.mxu1 %v4597_v15 }
 0x386   :  { %2354 = vmatmul.mubr.bf16.gmra.mrb[8].mxu1 %v5473_v21 }
 0x387   :  { %3831 = vmatprep.mubr.msk.bf16.mxu1 %vm1788_vm5, %v5513_v57  ;;  %2590 = vmatpush1.bf16.msra.mxu1 %v4595_v14  ;;  %v4647_v14 = vld [vmem:[%s6091_s3 + $0x404] ss:$8 sps:$4 sm:$0xff]  }
 0x388   :  { %2591 = vmatprep.subr.bf16.mxu1 %v4600_v12 }
 0x38b   :  { %2592 = vmatpush1.bf16.msra.mxu1 %v4598_v4 }
 0x38c   :  { %2593 = vmatprep.subr.bf16.mxu1 %v4603_v56  ;;  %v4648_v56 = vld [vmem:[%s6091_s3 + $0x410] ss:$8 sps:$4 sm:$0xff]  }
 0x38e   :  { %2364 = vmatmul.mubr.bf16.gmra.mrb[12].mxu1 %v5518_v61 }
 0x38f   :  { %2594 = vmatpush1.bf16.msra.mxu1 %v4601_v18  ;;  %3892 = vmatprep.mubr.msk.bf16.mxu1 %vm1788_vm5, %v5436_v55  ;;  %v4610_v55 = vld [vmem:[%s6091_s3 + $0x348] ss:$8 sps:$4 sm:$0xff]   ;;  %v4653_v18 = vld [vmem:[%s6091_s3 + $0x424] ss:$8 sps:$4 sm:$0xff]  }
 0x390   :  { %2595 = vmatprep.subr.bf16.mxu1 %v4606_v34  ;;  %v4651_v34 = vld [vmem:[%s6091_s3 + $0x420] ss:$8 sps:$4 sm:$0xff]  }
 0x393   :  { %2596 = vmatpush1.bf16.msra.mxu1 %v4604_v31  ;;  %v4659_v31 = vld [vmem:[%s6091_s3 + $0x444] ss:$8 sps:$4 sm:$0xff]  }
 0x394   :  { %2597 = vmatprep.subr.bf16.mxu1 %v4609_v16  ;;  %v4657_v16 = vld [vmem:[%s6091_s3 + $0x440] ss:$8 sps:$4 sm:$0xff]  }
 0x397   :  { %2598 = vmatpush1.bf16.msra.mxu1 %v4607_v59  ;;  %v4662_v59 = vld [vmem:[%s6091_s3 + $0x454] ss:$8 sps:$4 sm:$0xff]  }
 0x398   :  { %2599 = vmatprep.subr.bf16.mxu1 %v4612_v60  ;;  %v4660_v60 = vld [vmem:[%s6091_s3 + $0x450] ss:$8 sps:$4 sm:$0xff]  }
 0x39b   :  { %2600 = vmatpush1.bf16.msra.mxu1 %v4610_v55  ;;  %v4665_v55 = vld [vmem:[%s6091_s3 + $0x464] ss:$8 sps:$4 sm:$0xff]  }
 0x39c   :  { %2601 = vmatprep.subr.bf16.mxu1 %v4615_v19  ;;  %v4663_v19 = vld [vmem:[%s6091_s3 + $0x460] ss:$8 sps:$4 sm:$0xff]  }
 0x39f   :  { %2602 = vmatpush1.bf16.msra.mxu1 %v4613_v51  ;;  %v4668_v51 = vld [vmem:[%s6091_s3 + $0x474] ss:$8 sps:$4 sm:$0xff]  }
 0x3a0   :  { %2603 = vmatprep.subr.bf16.mxu1 %v4618_v7  ;;  %v3924_v7 = vld [vmem:[%s6091_s3 + $0x480] sm:$0x77] }
 0x3a3   :  { %2604 = vmatpush1.bf16.msra.mxu1 %v4616_v50  ;;  %v4666_v50 = vld [vmem:[%s6091_s3 + $0x470] ss:$8 sps:$4 sm:$0xff]  }
 0x3a4   :  { %2605 = vmatprep.subr.bf16.mxu1 %v4621_v6  ;;  %v3954_v6 = vcombine.high %v3924_v7, %v3924_v7 }
 0x3a7   :  { %2606 = vmatpush1.bf16.msra.mxu1 %v4619_v23  ;;  %v3953_v23 = vcombine.low %v3924_v7, %v3924_v7 }
 0x3a8   :  { %2607 = vmatprep.subr.bf16.mxu1 %v4624_v24 }
 0x3a9   :  { %v2849_v24 = vsel %vm1801_vm2, %v3953_v23, 0 }
 0x3ab   :  { %2608 = vmatpush1.bf16.msra.mxu1 %v4622_v33 }
 0x3ac   :  { %3891 = vmatprep.subr.msk.bf16.mxu1 %vm1801_vm2, %v3890_v41 }
 0x3af   :  { %2610 = vmatpush1.bf16.msra.mxu1 %v2576_v42 }
 0x3b0   :  { %2854 = vmatprep.subr.bf16.mxu1 %v4629_v37 }
 0x3b2   :  { %2614 = vmatmul.mubr.bf16.vlgmr.msra.gmra.mrb[0].mxu1 %v5444_v62  ;;  %v4633_v62 = vld [vmem:[%s6091_s3 + $0x3c0] ss:$8 sps:$4 sm:$0xff]  }
 0x3b3   :  { %3893 = vmatprep.mubr.msk.bf16.mxu1 %vm1788_vm5, %v5481_v22  ;;  %2855 = vmatpush1.bf16.msra.mxu1 %v4627_v44  ;;  %v1536_v22 = vmax.f32 %v5353_v10, %v4368_v48  ;;  %v4636_v10 = vld [vmem:[%s6091_s3 + $0x3d0] ss:$8 sps:$4 sm:$0xff]  }
 0x3b4   :  { %2856 = vmatprep.subr.bf16.mxu1 %v4632_v38 }
 0x3b5   :  { %v5779_v25 = vpack.c.bf16 %v1538_v29, %v1536_v22  ;;  %v4678_v29 = vld [vmem:[%s6093_s5 + $0x80] sm:$0xff]  }
 0x3b7   :  { %2857 = vmatpush1.bf16.msra.mxu1 %v4630_v47  ;;  %v2424_v17 = vrot.slane %v5779_v25, 4 }
 0x3b8   :  { %2858 = vmatprep.subr.bf16.mxu1 %v4635_v13 }
 0x3b9   :  { %v2425_v39 = vsel %vm1620_vm4, %v1637_v52, %v2424_v17  ;;  %v4650_v52 = vld [vmem:[%s6091_s3 + $0x414] ss:$8 sps:$4 sm:$0xff]  }
 0x3ba   :  { %2624 = vmatmul.mubr.bf16.gmra.mrb[4].mxu1 %v5489_v27  ;;  %v1535_v27 = vmax.f32 %v5351_v9, %v1489_v40  ;;  %v4642_v9 = vld [vmem:[%s6091_s3 + $0x3f0] ss:$8 sps:$4 sm:$0xff]  }
 0x3bb   :  { %3894 = vmatprep.mubr.msk.bf16.mxu1 %vm1788_vm5, %v5528_v63  ;;  %2859 = vmatpush1.bf16.msra.mxu1 %v4633_v62  ;;  %v4639_v63 = vld [vmem:[%s6091_s3 + $0x3e0] ss:$8 sps:$4 sm:$0xff]  }
 0x3bc   :  { %2860 = vmatprep.subr.bf16.mxu1 %v4638_v26  ;;  %v1549_v15 = vpack.c.bf16 %v1537_v5, %v1535_v27 }
 0x3be   :  { %v2422_v12 = vrot.slane %v1549_v15, 4 }
 0x3bf   :  { %2861 = vmatpush1.bf16.msra.mxu1 %v4636_v10 }
 0x3c0   :  { %2862 = vmatprep.subr.bf16.mxu1 %v4641_v3  ;;  %v2423_v4 = vsel %vm1620_vm4, %v1635_v49, %v2422_v12  ;;  %v4656_v49 = vld [vmem:[%s6091_s3 + $0x434] ss:$8 sps:$4 sm:$0xff]  }
 0x3c2   :  { %2634 = vmatmul.mubr.bf16.gmra.mrb[8].mxu1 %v5538_v2  ;;  %v4645_v2 = vld [vmem:[%s6091_s3 + $0x400] ss:$8 sps:$4 sm:$0xff]  }
 0x3c3   :  { %3895 = vmatprep.mubr.msk.bf16.mxu1 %vm1788_vm5, %v2425_v39  ;;  %2863 = vmatpush1.bf16.msra.mxu1 %v4639_v63 }
 0x3c4   :  { %2864 = vmatprep.subr.bf16.mxu1 %v4644_v8 }
 0x3c7   :  { %2865 = vmatpush1.bf16.msra.mxu1 %v4642_v9 }
 0x3c8   :  { %2866 = vmatprep.subr.bf16.mxu1 %v4647_v14 }
 0x3ca   :  { %2644 = vmatmul.mubr.bf16.gmra.mrb[12].mxu1 %v2423_v4 }
 0x3cb   :  { %2867 = vmatpush1.bf16.msra.mxu1 %v4645_v2  ;;  %3956 = vmatprep.mubr.msk.bf16.mxu1 %vm1788_vm5, %v5423_v53  ;;  %v4654_v53 = vld [vmem:[%s6091_s3 + $0x430] ss:$8 sps:$4 sm:$0xff]  }
 0x3cc   :  { %2868 = vmatprep.subr.bf16.mxu1 %v4650_v52 }
 0x3cf   :  { %2869 = vmatpush1.bf16.msra.mxu1 %v4648_v56 }
 0x3d0   :  { %2870 = vmatprep.subr.bf16.mxu1 %v4653_v18 }
 0x3d3   :  { %2871 = vmatpush1.bf16.msra.mxu1 %v4651_v34 }
 0x3d4   :  { %2872 = vmatprep.subr.bf16.mxu1 %v4656_v49 }
 0x3d7   :  { %2873 = vmatpush1.bf16.msra.mxu1 %v4654_v53 }
 0x3d8   :  { %2874 = vmatprep.subr.bf16.mxu1 %v4659_v31 }
 0x3db   :  { %2875 = vmatpush1.bf16.msra.mxu1 %v4657_v16 }
 0x3dc   :  { %2876 = vmatprep.subr.bf16.mxu1 %v4662_v59 }
 0x3df   :  { %2877 = vmatpush1.bf16.msra.mxu1 %v4660_v60 }
 0x3e0   :  { %2878 = vmatprep.subr.bf16.mxu1 %v4665_v55 }
 0x3e3   :  { %2879 = vmatpush1.bf16.msra.mxu1 %v4663_v19 }
 0x3e4   :  { %2880 = vmatprep.subr.bf16.mxu1 %v4668_v51 }
 0x3e7   :  { %2881 = vmatpush1.bf16.msra.mxu1 %v4666_v50 }
 0x3e8   :  { %3955 = vmatprep.subr.msk.bf16.mxu1 %vm1801_vm2, %v3954_v6 }
 0x3eb   :  { %2883 = vmatpush1.bf16.msra.mxu1 %v2849_v24 }
 0x3ec   :  { %3146 = vmatprep.subr.bf16.mxu1 %v4707_v1 }
 0x3ee   :  { %2887 = vmatmul.mubr.bf16.vlgmr.msra.gmra.mrb[0].mxu1 %v5428_v54  ;;  %v4672_v54 = vld [vmem:[%s6093_s5 + $0x50] sm:$0xff]  }
 0x3ef   :  { %3957 = vmatprep.mubr.msk.bf16.mxu1 %vm1788_vm5, %v5468_v20  ;;  %3147 = vmatpush1.bf16.msra.mxu1 %v4671_v30  ;;  %v4673_v20 = vld [vmem:[%s6093_s5 + $0x58] sm:$0xff]  }
 0x3f0   :  { %3148 = vmatprep.subr.bf16.mxu1 %v4707_v1 }
 0x3f3   :  { %3149 = vmatpush1.bf16.msra.mxu1 %v4672_v54 }
 0x3f4   :  { %3150 = vmatprep.subr.bf16.mxu1 %v4707_v1 }
 0x3f6   :  { %2897 = vmatmul.mubr.bf16.gmra.mrb[4].mxu1 %v5473_v21  ;;  %v4674_v21 = vld [vmem:[%s6093_s5 + $0x60] sm:$0xff]  }
 0x3f7   :  { %3958 = vmatprep.mubr.msk.bf16.mxu1 %vm1788_vm5, %v5513_v57  ;;  %3151 = vmatpush1.bf16.msra.mxu1 %v4673_v20  ;;  %v4675_v57 = vld [vmem:[%s6093_s5 + $0x68] sm:$0xff]  }
 0x3f8   :  { %3152 = vmatprep.subr.bf16.mxu1 %v4707_v1 }
 0x3fb   :  { %3153 = vmatpush1.bf16.msra.mxu1 %v4674_v21 }
 0x3fc   :  { %3154 = vmatprep.subr.bf16.mxu1 %v4707_v1 }
 0x3fe   :  { %2907 = vmatmul.mubr.bf16.gmra.mrb[8].mxu1 %v5518_v61  ;;  %v2943_v61 = vld [vmem:[%s6094_s4] sm:$0x3] }
 0x3ff   :  { %3959 = vmatprep.mubr.msk.bf16.mxu1 %vm1788_vm5, %v5779_v25  ;;  %3155 = vmatpush1.bf16.msra.mxu1 %v4675_v57  ;;  %v5902_v33 = vrot.slane %v2943_v61, %v1278_v35  ;;  %v5906_v41 = vrot.slane %v2943_v61, %v1282_v36  ;;  %v4679_v25 = vld [vmem:[%s6093_s5 + $0x88] sm:$0x3f]  }
 0x400   :  { %3156 = vmatprep.subr.bf16.mxu1 %v4707_v1  ;;  %v3144_v17 = vsel %vm179_vm0, %v4679_v25, 0 }
 0x403   :  { %3157 = vmatpush1.bf16.msra.mxu1 %v4676_v58 }
 0x404   :  { %3158 = vmatprep.subr.bf16.mxu1 %v4707_v1 }
 0x406   :  { %2917 = vmatmul.mubr.bf16.gmra.mrb[12].mxu1 %v1549_v15 }
 0x407   :  { %3159 = vmatpush1.bf16.msra.mxu1 %v4677_v32 }
 0x408   :  { %3160 = vmatprep.subr.bf16.mxu1 %v4707_v1 }
 0x40b   :  { %3161 = vmatpush1.bf16.msra.mxu1 %v4678_v29 }
 0x40c   :  { %3162 = vmatprep.subr.bf16.mxu1 %v4707_v1 }
 0x40f   :  { %3163 = vmatpush1.bf16.msra.mxu1 %v3144_v17  ;;  %v4687_v17 = vld [vmem:[%s6093_s5 + $0x38] sm:$0xff]  }
 0x410   :  { %3245 = vmatprep.subr.bf16.mxu1 %v4707_v1 }
 0x4c1   :  { %v2888_v42 = vpop.f32.mrb[0].mxu1 }
 0x4c2   :  { %v2955_v37 = vadd.f32 %v5902_v33, %v2888_v42  ;;  %v2890_v43 = vpop.f32.mrb[1].mxu1 }
 0x4c3   :  { %v2956_v44 = vadd.f32 %v5906_v41, %v2890_v43  ;;  %v2892_v38 = vpop.f32.mrb[2].mxu1 }
 0x4c4   :  { %v2957_v35 = vadd.f32 %v5902_v33, %v2892_v38  ;;  %v2894_v36 = vpop.f32.mrb[3].mxu1  ;;  %v2971_v46 = vmax.f32 %v2955_v37, 0.0 }
 0x4c5   :  { %v2958_v45 = vadd.f32 %v5906_v41, %v2894_v36  ;;  %v2972_v48 = vmax.f32 %v2956_v44, 0.0 }
 0x4c6   :  { %v2973_v47 = vmax.f32 %v2957_v35, 0.0 }
 0x4c7   :  { %v2974_v13 = vmax.f32 %v2958_v45, 0.0 }
 0x4c8   :  { %v5923_v11 = vmax.f32 %v2971_v46, %v2973_v47 }
 0x4c9   :  { %v5925_v62 = vmax.f32 %v2972_v48, %v2974_v13  ;;  %v2898_v22 = vpop.f32.mrb[4].mxu1 }
 0x4ca   :  { %v2959_v28 = vadd.f32 %v5902_v33, %v2898_v22  ;;  %v2900_v26 = vpop.f32.mrb[5].mxu1 }
 0x4cb   :  { %v2960_v0 = vadd.f32 %v5906_v41, %v2900_v26  ;;  %v2902_v10 = vpop.f32.mrb[6].mxu1  ;;  %v4374_v40 = vpack.i.bf16 %v5925_v62, %v5923_v11  ;;  %v4680_v26 = vld [vmem:[%s6093_s5] sm:$0xff]  }
 0x4cc   :  { %v2961_v3 = vadd.f32 %v5902_v33, %v2902_v10  ;;  %v2904_v5 = vpop.f32.mrb[7].mxu1  ;;  %v2975_v63 = vmax.f32 %v2959_v28, 0.0  ;;  %v4684_v10 = vld [vmem:[%s6093_s5 + $0x20] sm:$0xff]  }
 0x4cd   :  { %v2962_v27 = vadd.f32 %v5906_v41, %v2904_v5  ;;  %4375 = vrot.lane.b32.xlu0 %v4374_v40, %s4709_s27  ;;  %v2976_v15 = vmax.f32 %v2960_v0, 0.0  ;;  %v4683_v0 = vld [vmem:[%s6093_s5 + $0x18] sm:$0xff]   ;;  %v4685_v40 = vld [vmem:[%s6093_s5 + $0x28] sm:$0xff]  }
 0x4ce   :  { %v2977_v8 = vmax.f32 %v2961_v3, 0.0  ;;  %v4686_v3 = vld [vmem:[%s6093_s5 + $0x30] sm:$0xff]  }
 0x4cf   :  { %v2978_v39 = vmax.f32 %v2962_v27, 0.0 }
 0x4d0   :  { %v2989_v9 = vmax.f32 %v2975_v63, %v2977_v8  ;;  %v4688_v63 = vld [vmem:[%s6093_s5 + $0x40] sm:$0x3f]  }
 0x4d1   :  { %v2990_v14 = vmax.f32 %v2976_v15, %v2978_v39  ;;  %v2908_v12 = vpop.f32.mrb[8].mxu1  ;;  %v3243_v39 = vsel %vm179_vm0, %v4688_v63, 0 }
 0x4d2   :  { %v2963_v2 = vadd.f32 %v5902_v33, %v2908_v12  ;;  %v2910_v52 = vpop.f32.mrb[9].mxu1  ;;  %v4689_v12 = vld [vmem:[%s6093_s5 + $0x90] sm:$0xff]  }
 0x4d3   :  { %v2964_v4 = vadd.f32 %v5906_v41, %v2910_v52  ;;  %v2912_v56 = vpop.f32.mrb[10].mxu1  ;;  %v4379_v18 = vpack.i.bf16 %v2990_v14, %v2989_v9  ;;  %v4690_v52 = vld [vmem:[%s6093_s5 + $0x98] sm:$0xff]  }
 0x4d4   :  { %v2965_v34 = vadd.f32 %v5902_v33, %v2912_v56  ;;  %v2914_v49 = vpop.f32.mrb[11].mxu1  ;;  %v2979_v31 = vmax.f32 %v2963_v2, 0.0  ;;  %v4692_v56 = vld [vmem:[%s6093_s5 + $0xa8] sm:$0xff]  }
 0x4d5   :  { %v2966_v53 = vadd.f32 %v5906_v41, %v2914_v49  ;;  %4380 = vrot.lane.b32.xlu1 %v4379_v18, %s4709_s27  ;;  %v2980_v59 = vmax.f32 %v2964_v4, 0.0  ;;  %v4691_v4 = vld [vmem:[%s6093_s5 + $0xa0] sm:$0xff]   ;;  %v4693_v18 = vld [vmem:[%s6093_s5 + $0xb0] sm:$0xff]  }
 0x4d6   :  { %v2981_v16 = vmax.f32 %v2965_v34, 0.0  ;;  %v4694_v34 = vld [vmem:[%s6093_s5 + $0xb8] sm:$0xff]   ;;  %v4695_v49 = vld [vmem:[%s6093_s5 + $0xc0] sm:$0xff]  }
 0x4d7   :  { %v2982_v60 = vmax.f32 %v2966_v53, 0.0 }
 0x4d8   :  { %v5945_v55 = vmax.f32 %v2979_v31, %v2981_v16  ;;  %v4696_v16 = vld [vmem:[%s6093_s5 + $0xc8] sm:$0xff]  }
 0x4d9   :  { %v5947_v19 = vmax.f32 %v2980_v59, %v2982_v60  ;;  %v2918_v51 = vpop.f32.mrb[12].mxu1  ;;  %v4697_v59 = vld [vmem:[%s6093_s5 + $0xd0] sm:$0x3f]  }
 0x4da   :  { %v2967_v7 = vadd.f32 %v5902_v33, %v2918_v51  ;;  %v2920_v50 = vpop.f32.mrb[13].mxu1 }
 0x4db   :  { %v2968_v6 = vadd.f32 %v5906_v41, %v2920_v50  ;;  %v2922_v23 = vpop.f32.mrb[14].mxu1  ;;  %v4384_v24 = vpack.i.bf16 %v5947_v19, %v5945_v55 }
 0x4dc   :  { %v2969_v30 = vadd.f32 %v5902_v33, %v2922_v23  ;;  %v2924_v54 = vpop.f32.mrb[15].mxu1  ;;  %v2983_v21 = vmax.f32 %v2967_v7, 0.0  ;;  %v3361_v7 = vsel %vm179_vm0, %v4697_v59, 0 }
 0x4dd   :  { %v2970_v20 = vadd.f32 %v5906_v41, %v2924_v54  ;;  %4385 = vrot.lane.b32.xlu0 %v4384_v24, %s4709_s27  ;;  %v2984_v61 = vmax.f32 %v2968_v6, 0.0  ;;  %v4698_v6 = vld [vmem:[%s6093_s5 + $0xd8] sm:$0xff]   ;;  %v4701_v54 = vld [vmem:[%s6093_s5 + $0xf0] sm:$0xff]  }
 0x4de   :  { %v2985_v57 = vmax.f32 %v2969_v30, 0.0  ;;  %v4699_v30 = vld [vmem:[%s6093_s5 + $0xe0] sm:$0xff]  }
 0x4df   :  { %v2986_v58 = vmax.f32 %v2970_v20, 0.0  ;;  %v4702_v20 = vld [vmem:[%s6093_s5 + $0xf8] sm:$0xff]  }
 0x4e0   :  { %v5956_v42 = vmax.f32 %v2983_v21, %v2985_v57  ;;  %v4703_v21 = vld [vmem:[%s6093_s5 + $0x100] sm:$0xff]   ;;  %v4704_v57 = vld [vmem:[%s6093_s5 + $0x108] sm:$0xff]  }
 0x4e1   :  { %v2994_v37 = vmax.f32 %v2984_v61, %v2986_v58  ;;  %v4705_v61 = vld [vmem:[%s6093_s5 + $0x110] sm:$0xff]   ;;  %v4706_v58 = vld [vmem:[%s6093_s5 + $0x118] sm:$0x3f]  }
 0x4e3   :  { %v4389_v43 = vpack.i.bf16 %v2994_v37, %v5956_v42 }
 0x4e5   :  { %4390 = vrot.lane.b32.xlu1 %v4389_v43, %s4709_s27 }
 0x53f   :  { %v4376_v44 = vpop.permute.xlu0 %4375 }
 0x540   :  { %v4378_v38 = vunpack.i.h.bf16 %v4376_v44  ;;  %v4377_v32 = vunpack.i.l.bf16 %v4376_v44 }
 0x542   :  { %v3020_v41 = vsel %vm3019_vm6, %v4377_v32, %v4378_v38  ;;  %v3033_v45 = vmax.f32 %v5925_v62, %v4378_v38  ;;  %v4682_v62 = vld [vmem:[%s6093_s5 + $0x10] sm:$0xff]  }
 0x543   :  { %v3032_v48 = vmax.f32 %v5923_v11, %v3020_v41  ;;  %v4681_v11 = vld [vmem:[%s6093_s5 + $0x8] sm:$0xff]  }
 0x547   :  { %v4381_v33 = vpop.permute.xlu1 %4380 }
 0x548   :  { %v4383_v35 = vunpack.i.h.bf16 %v4381_v33  ;;  %v4382_v36 = vunpack.i.l.bf16 %v4381_v33 }
 0x54a   :  { %v3035_v46 = vmax.f32 %v2990_v14, %v4383_v35  ;;  %v3021_v47 = vsel %vm3019_vm6, %v4382_v36, %v4383_v35 }
 0x54b   :  { %v3034_v13 = vmax.f32 %v2989_v9, %v3021_v47 }
 0x54c   :  { %v3041_v29 = vpack.c.bf16 %v3035_v46, %v3033_v45 }
 0x54d   :  { %v3040_v22 = vpack.c.bf16 %v3034_v13, %v3032_v48 }
 0x54e   :  { %v3084_v28 = vrot.slane %v3041_v29, 4 }
 0x54f   :  { %v3083_v25 = vrot.slane %v3040_v22, 4  ;;  %v4386_v27 = vpop.permute.xlu0 %4385 }
 0x550   :  { %3987 = vmatprep.mubr.msk.bf16.mxu1 %vm3139_vm7, %v3084_v28  ;;  %v4388_v15 = vunpack.i.h.bf16 %v4386_v27  ;;  %v4387_v31 = vunpack.i.l.bf16 %v4386_v27 }
 0x551   :  { %3179 = vmatmul.mubr.bf16.vlgmr.msra.gmra.mrb[16].mxu1 %v3083_v25 }
 0x552   :  { %3246 = vmatpush1.bf16.msra.mxu1 %v4680_v26  ;;  %3997 = vmatprep.mubr.msk.bf16.mxu1 %vm3139_vm7, %v3041_v29  ;;  %v3037_v14 = vmax.f32 %v5947_v19, %v4388_v15  ;;  %v3022_v19 = vsel %vm3019_vm6, %v4387_v31, %v4388_v15 }
 0x553   :  { %3247 = vmatprep.subr.bf16.mxu1 %v4707_v1  ;;  %v3036_v50 = vmax.f32 %v5945_v55, %v3022_v19  ;;  %v4700_v55 = vld [vmem:[%s6093_s5 + $0xe8] sm:$0xff]  }
 0x556   :  { %3248 = vmatpush1.bf16.msra.mxu1 %v4681_v11 }
 0x557   :  { %3249 = vmatprep.subr.bf16.mxu1 %v4707_v1  ;;  %v4391_v5 = vpop.permute.xlu1 %4390 }
 0x558   :  { %v4393_v8 = vunpack.i.h.bf16 %v4391_v5  ;;  %v4392_v53 = vunpack.i.l.bf16 %v4391_v5 }
 0x55a   :  { %3250 = vmatpush1.bf16.msra.mxu1 %v4682_v62  ;;  %v3039_v9 = vmax.f32 %v2994_v37, %v4393_v8  ;;  %v3023_v60 = vsel %vm3019_vm6, %v4392_v53, %v4393_v8 }
 0x55b   :  { %3251 = vmatprep.subr.bf16.mxu1 %v4707_v1  ;;  %v3038_v51 = vmax.f32 %v5956_v42, %v3023_v60  ;;  %v3485_v42 = vsel %vm179_vm0, %v4706_v58, 0 }
 0x55c   :  { %v3043_v2 = vpack.c.bf16 %v3039_v9, %v3037_v14 }
 0x55d   :  { %v3042_v23 = vpack.c.bf16 %v3038_v51, %v3036_v50 }
 0x55e   :  { %3252 = vmatpush1.bf16.msra.mxu1 %v4683_v0  ;;  %v3426_v24 = vrot.slane %v3043_v2, 4 }
 0x55f   :  { %3253 = vmatprep.subr.bf16.mxu1 %v4707_v1  ;;  %v3425_v37 = vrot.slane %v3042_v23, 4 }
 0x562   :  { %3254 = vmatpush1.bf16.msra.mxu1 %v4684_v10 }
 0x563   :  { %3255 = vmatprep.subr.bf16.mxu1 %v4707_v1 }
 0x566   :  { %3256 = vmatpush1.bf16.msra.mxu1 %v4685_v40 }
 0x567   :  { %3257 = vmatprep.subr.bf16.mxu1 %v4707_v1 }
 0x56a   :  { %3258 = vmatpush1.bf16.msra.mxu1 %v4686_v3 }
 0x56b   :  { %3259 = vmatprep.subr.bf16.mxu1 %v4707_v1 }
 0x56e   :  { %3260 = vmatpush1.bf16.msra.mxu1 %v4687_v17 }
 0x56f   :  { %3261 = vmatprep.subr.bf16.mxu1 %v4707_v1 }
 0x572   :  { %3262 = vmatpush1.bf16.msra.mxu1 %v3243_v39 }
 0x573   :  { %3363 = vmatprep.subr.bf16.mxu1 %v4707_v1 }
 0x575   :  { %3278 = vmatmul.mubr.bf16.vlgmr.msra.gmra.mrb[20].mxu1 %v3040_v22  ;;  %v4054_v22 = vld [vmem:[%s6095_s6] ss:$0 sm:$0xff] }
 0x576   :  { %3364 = vmatpush1.bf16.msra.mxu1 %v4689_v12  ;;  %4025 = vmatprep.mubr.msk.bf16.mxu1 %vm3139_vm7, %v3043_v2 }
 0x577   :  { %3365 = vmatprep.subr.bf16.mxu1 %v4707_v1 }
 0x57a   :  { %3366 = vmatpush1.bf16.msra.mxu1 %v4690_v52 }
 0x57b   :  { %3367 = vmatprep.subr.bf16.mxu1 %v4707_v1 }
 0x57e   :  { %3368 = vmatpush1.bf16.msra.mxu1 %v4691_v4 }
 0x57f   :  { %3369 = vmatprep.subr.bf16.mxu1 %v4707_v1 }
 0x582   :  { %3370 = vmatpush1.bf16.msra.mxu1 %v4692_v56 }
 0x583   :  { %3371 = vmatprep.subr.bf16.mxu1 %v4707_v1 }
 0x586   :  { %3372 = vmatpush1.bf16.msra.mxu1 %v4693_v18 }
 0x587   :  { %3373 = vmatprep.subr.bf16.mxu1 %v4707_v1 }
 0x58a   :  { %3374 = vmatpush1.bf16.msra.mxu1 %v4694_v34 }
 0x58b   :  { %3375 = vmatprep.subr.bf16.mxu1 %v4707_v1 }
 0x58e   :  { %3376 = vmatpush1.bf16.msra.mxu1 %v4695_v49 }
 0x58f   :  { %3377 = vmatprep.subr.bf16.mxu1 %v4707_v1 }
 0x592   :  { %3378 = vmatpush1.bf16.msra.mxu1 %v4696_v16 }
 0x593   :  { %3379 = vmatprep.subr.bf16.mxu1 %v4707_v1 }
 0x596   :  { %3380 = vmatpush1.bf16.msra.mxu1 %v3361_v7 }
 0x597   :  { %3487 = vmatprep.subr.bf16.mxu1 %v4707_v1 }
 0x599   :  { %3396 = vmatmul.mubr.bf16.vlgmr.msra.gmra.mrb[24].mxu1 %v3042_v23 }
 0x59a   :  { %3488 = vmatpush1.bf16.msra.mxu1 %v4698_v6  ;;  %4053 = vmatprep.mubr.msk.bf16.mxu1 %vm3139_vm7, %v3426_v24 }
 0x59b   :  { %3489 = vmatprep.subr.bf16.mxu1 %v4707_v1 }
 0x59e   :  { %3490 = vmatpush1.bf16.msra.mxu1 %v4699_v30 }
 0x59f   :  { %3491 = vmatprep.subr.bf16.mxu1 %v4707_v1 }
 0x5a2   :  { %3492 = vmatpush1.bf16.msra.mxu1 %v4700_v55 }
 0x5a3   :  { %3493 = vmatprep.subr.bf16.mxu1 %v4707_v1 }
 0x5a6   :  { %3494 = vmatpush1.bf16.msra.mxu1 %v4701_v54 }
 0x5a7   :  { %3495 = vmatprep.subr.bf16.mxu1 %v4707_v1 }
 0x5aa   :  { %3496 = vmatpush1.bf16.msra.mxu1 %v4702_v20 }
 0x5ab   :  { %3497 = vmatprep.subr.bf16.mxu1 %v4707_v1 }
 0x5ae   :  { %3498 = vmatpush1.bf16.msra.mxu1 %v4703_v21 }
 0x5af   :  { %3499 = vmatprep.subr.bf16.mxu1 %v4707_v1 }
 0x5b2   :  { %3500 = vmatpush1.bf16.msra.mxu1 %v4704_v57 }
 0x5b3   :  { %3501 = vmatprep.subr.bf16.mxu1 %v4707_v1 }
 0x5b6   :  { %3502 = vmatpush1.bf16.msra.mxu1 %v4705_v61 }
 0x5b7   :  { %3503 = vmatprep.subr.bf16.mxu1 %v4707_v1 }
 0x5ba   :  { %3504 = vmatpush1.bf16.msra.mxu1 %v3485_v42 }
 0x5bd   :  { %3520 = vmatmul.mubr.bf16.vlgmr.msra.gmra.mrb[28].mxu1 %v3425_v37 }
 0x624   :  { %v3180_v43 = vpop.f32.mrb[16].mxu1 }
 0x625   :  { %v3182_v44 = vpop.f32.mrb[17].mxu1 }
 0x626   :  { %v3183_v38 = vpop.f32.mrb[18].mxu1 }
 0x627   :  { %v3184_v32 = vpop.f32.mrb[19].mxu1 }
 0x648   :  { %v3279_v33 = vpop.f32.mrb[20].mxu1 }
 0x649   :  { %v3280_v41 = vadd.f32 %v3279_v33, %v3180_v43  ;;  %v3281_v35 = vpop.f32.mrb[21].mxu1 }
 0x64a   :  { %v3282_v36 = vpop.f32.mrb[22].mxu1 }
 0x64b   :  { %v3283_v45 = vpop.f32.mrb[23].mxu1 }
 0x66c   :  { %v3397_v46 = vpop.f32.mrb[24].mxu1 }
 0x66d   :  { %v3403_v47 = vadd.f32 %v3397_v46, %v3280_v41  ;;  %v3399_v48 = vpop.f32.mrb[25].mxu1 }
 0x66e   :  { %v3400_v13 = vpop.f32.mrb[26].mxu1 }
 0x66f   :  { %v3401_v29 = vpop.f32.mrb[27].mxu1 }
 0x690   :  { %v3521_v1 = vpop.f32.mrb[28].mxu1 }
 0x691   :  { %v3527_v28 = vadd.f32 %v3521_v1, %v3403_v47  ;;  %v3523_v26 = vpop.f32.mrb[29].mxu1 }
 0x692   :  { %v3524_v25 = vpop.f32.mrb[30].mxu1 }
 0x693   :  { %v3535_v11 = vadd.f32 %v4054_v22, %v3527_v28  ;;  %v3525_v62 = vpop.f32.mrb[31].mxu1 }
 0x695   :  { %3536 = vst [vmem:[%s6096_s7] sm:$0xff] %v3535_v11 }

</bundles_post_ra>
